<compile_context>
chip_gen: v6e
topology: v6e:2x2x1
jax: 0.10.0
libtpu: 0.0.40
codegen_flags: <defaults>
</compile_context>

<pallas_src>
import functools

import jax
import jax.numpy as jnp
from jax import lax
from jax.experimental import pallas as pl
from jax.experimental.pallas import tpu as pltpu

_BN_EPS = 1e-5
_VMEM_LIMIT = 48 * 1024 * 1024  # fits v7x (64 MiB physical) with headroom; fine on v5e/v6e


# ----------------------------------------------------------------------------
# Direct 3x3 conv + folded-BN + ReLU Pallas kernel
# ----------------------------------------------------------------------------
def _conv3x3_kernel(x_ref, w_ref, scale_ref, bias_ref, o_ref, *, th, wd, relu):
    """One (row-band, cout-tile) block.

    x_ref:    (1, th+2, wd+2, cin)  bf16 padded input band (with halo)
    w_ref:    (9, cin, tn)          bf16 weights, tap-major (kh*3+kw)
    scale/bias: (1, tn)             f32 folded BN
    o_ref:    (1, th, wd, tn)       bf16 output band
    """
    cin = x_ref.shape[-1]
    tn = o_ref.shape[-1]

    xblk = x_ref[0]                                   # (th+2, wd+2, cin)
    acc = jnp.zeros((th * wd, tn), jnp.float32)
    for kh in range(3):
        for kw in range(3):
            a = xblk[kh:kh + th, kw:kw + wd, :].reshape(th * wd, cin)
            acc += jnp.dot(a, w_ref[kh * 3 + kw],
                           preferred_element_type=jnp.float32)

    y = acc * scale_ref[...] + bias_ref[...]
    if relu:
        y = jnp.maximum(y, 0.0)
    o_ref[...] = y.reshape(1, th, wd, tn).astype(o_ref.dtype)


def _pick_band_rows(h, w):
    """Largest divisor of h with th <= 32 and th*w <= 8192 (bounds VMEM per block)."""
    cap = max(1, min(32, 8192 // max(w, 1)))
    for th in range(min(h, cap), 0, -1):
        if h % th == 0:
            return th
    return 1


def _pick_cout_tile(cout):
    for tn in (256, 128):
        if cout % tn == 0:
            return tn
    return cout  # e.g. 64 for the inc stage (full-dim block, masked stores accepted)


def conv3x3_bn_relu(x, w_hwio, bn_scale, bn_bias):
    """3x3 same-padding conv (no conv bias) + folded BN + ReLU.

    x: (N, H, W, Cin) (any float dtype; computed in bf16), w_hwio: (3,3,Cin,Cout) f32.
    Returns (N, H, W, Cout) bf16.
    """
    n, h, w, cin = x.shape
    cout = w_hwio.shape[-1]

    # Pad tiny channel counts (inc layer: Cin=3) up to 8 lanes with zeros.
    if cin < 8:
        pad_c = 8 - cin
        x = jnp.pad(x, ((0, 0), (0, 0), (0, 0), (0, pad_c)))
        w_hwio = jnp.pad(w_hwio, ((0, 0), (0, 0), (0, pad_c), (0, 0)))
        cin = 8

    th = _pick_band_rows(h, w)
    nb = h // th
    tn = _pick_cout_tile(cout)

    # Zero-pad spatially, then split into row bands with a 2-row halo. This is the
    # only activation copy (1 + 2/th of the input), replacing the 9x im2col buffer.
    xp = jnp.pad(x, ((0, 0), (1, 1), (1, 1), (0, 0)))          # (n, h+2, w+2, cin)
    if nb == 1:
        xb = xp
    else:
        bands = [xp[:, b * th:b * th + th + 2] for b in range(nb)]
        xb = jnp.stack(bands, axis=1).reshape(n * nb, th + 2, w + 2, cin)
    xb = xb.astype(jnp.bfloat16)

    w9 = w_hwio.reshape(9, cin, cout).astype(jnp.bfloat16)
    scale2 = bn_scale.reshape(1, cout).astype(jnp.float32)
    bias2 = bn_bias.reshape(1, cout).astype(jnp.float32)

    nb_total = n * nb
    kernel = functools.partial(_conv3x3_kernel, th=th, wd=w, relu=True)
    y = pl.pallas_call(
        kernel,
        out_shape=jax.ShapeDtypeStruct((nb_total, th, w, cout), jnp.bfloat16),
        grid_spec=pltpu.PrefetchScalarGridSpec(
            num_scalar_prefetch=0,
            grid=(nb_total, cout // tn),
            in_specs=[
                pl.BlockSpec((1, th + 2, w + 2, cin), lambda b, j: (b, 0, 0, 0)),
                pl.BlockSpec((9, cin, tn), lambda b, j: (0, 0, j)),
                pl.BlockSpec((1, tn), lambda b, j: (0, j)),
                pl.BlockSpec((1, tn), lambda b, j: (0, j)),
            ],
            out_specs=pl.BlockSpec((1, th, w, tn), lambda b, j: (b, 0, 0, j)),
        ),
        compiler_params=pltpu.CompilerParams(
            dimension_semantics=("parallel", "parallel"),
            vmem_limit_bytes=_VMEM_LIMIT,
        ),
    )(xb, w9, scale2, bias2)

    return y.reshape(n, nb, th, w, cout).reshape(n, h, w, cout)


# ----------------------------------------------------------------------------
# Glue ops (cheap, stay in plain JAX)
# ----------------------------------------------------------------------------
def maxpool2(x):
    """MaxPool2d(kernel=2, stride=2) in NHWC."""
    n, h, w, c = x.shape
    return x.reshape(n, h // 2, 2, w // 2, 2, c).max(axis=(2, 4))


def double_conv(p, x):
    x = conv3x3_bn_relu(x, p["w1"], p["bn1_scale"], p["bn1_bias"])
    x = conv3x3_bn_relu(x, p["w2"], p["bn2_scale"], p["bn2_bias"])
    return x


# ----------------------------------------------------------------------------
# Parameter init (deterministic, synthetic)
# ----------------------------------------------------------------------------
def _init_double_conv(key, cin, cout):
    k1, k2 = jax.random.split(key)
    std1 = (2.0 / (9 * cin)) ** 0.5
    std2 = (2.0 / (9 * cout)) ** 0.5
    folded_scale = 1.0 / (1.0 + _BN_EPS) ** 0.5   # gamma=1, running_var=1
    return {
        "w1": jax.random.normal(k1, (3, 3, cin, cout), jnp.float32) * std1,
        "w2": jax.random.normal(k2, (3, 3, cout, cout), jnp.float32) * std2,
        "bn1_scale": jnp.full((cout,), folded_scale, jnp.float32),
        "bn1_bias": jnp.zeros((cout,), jnp.float32),
        "bn2_scale": jnp.full((cout,), folded_scale, jnp.float32),
        "bn2_bias": jnp.zeros((cout,), jnp.float32),
    }


def init_moco_unet(key, num_classes, unet_channels=3):
    ks = jax.random.split(key, 7)
    return {
        "inc": _init_double_conv(ks[0], unet_channels, 64),
        "down1": _init_double_conv(ks[1], 64, 128),
        "down2": _init_double_conv(ks[2], 128, 256),
        "down3": _init_double_conv(ks[3], 256, 512),
        "down4": _init_double_conv(ks[4], 512, 1024),
        # nn.Linear(1024, num_classes): stored as (in, out) so y = x @ W + b
        "fc_w": jax.random.normal(ks[5], (1024, num_classes), jnp.float32)
                * (1.0 / 1024.0) ** 0.5,
        "fc_b": jax.random.normal(ks[6], (num_classes,), jnp.float32) * 0.01,
    }


# ----------------------------------------------------------------------------
# MOCOUNet forward (encoder + pool + classifier)
# ----------------------------------------------------------------------------
def moco_unet_forward(params, x_nchw):
    # NCHW (PyTorch) -> NHWC, bf16 activations for the conv stack.
    x = jnp.transpose(x_nchw, (0, 2, 3, 1)).astype(jnp.bfloat16)

    x1 = double_conv(params["inc"], x)                    # (N, H,    W,    64)
    x2 = double_conv(params["down1"], maxpool2(x1))       # (N, H/2,  W/2,  128)
    x3 = double_conv(params["down2"], maxpool2(x2))       # (N, H/4,  W/4,  256)
    x4 = double_conv(params["down3"], maxpool2(x3))       # (N, H/8,  W/8,  512)
    x5 = double_conv(params["down4"], maxpool2(x4))       # (N, H/16, W/16, 1024)

    # AdaptiveAvgPool2d(1) + reshape(out.shape[:-2]) -> (N, 1024), in f32.
    pooled = jnp.mean(x5.astype(jnp.float32), axis=(1, 2))

    # Classifier Linear(1024, num_classes): degenerate (batch x 10) GEMM ->
    # plain XLA is at least as fast as a Pallas call here (per perf review).
    logits = pooled @ params["fc_w"] + params["fc_b"]
    return logits


# ----------------------------------------------------------------------------
if __name__ == "__main__":
    NUM_CLASSES = 10
    key = jax.random.PRNGKey(0)
    k_params, k_x, k_cx, k_cw = jax.random.split(key, 4)

    # Sanity check: Pallas direct conv vs XLA conv reference (bf16 in, f32 accum).
    xc = jax.random.normal(k_cx, (2, 16, 16, 8), jnp.float32).astype(jnp.bfloat16)
    wc = jax.random.normal(k_cw, (3, 3, 8, 64), jnp.float32) * 0.1
    sc = jnp.ones((64,), jnp.float32)
    bc = jnp.zeros((64,), jnp.float32)
    got = jax.jit(conv3x3_bn_relu)(xc, wc, sc, bc).astype(jnp.float32)
    ref = lax.conv_general_dilated(
        xc.astype(jnp.float32), wc.astype(jnp.bfloat16).astype(jnp.float32),
        window_strides=(1, 1), padding="SAME",
        dimension_numbers=("NHWC", "HWIO", "NHWC"))
    ref = jnp.maximum(ref * sc + bc, 0.0)
    jax.block_until_ready(got)
    assert jnp.allclose(got, ref, atol=5e-2, rtol=5e-2), \
        float(jnp.max(jnp.abs(got - ref)))

    # Full MOCOUNet forward at small shapes: batch=2, 3 channels, 16x16 spatial
    # (spatial must be divisible by 16 for the four maxpools).
    params = init_moco_unet(k_params, NUM_CLASSES, unet_channels=3)
    x = jax.random.normal(k_x, (2, 3, 16, 16), jnp.float32)

    fwd = jax.jit(functools.partial(moco_unet_forward, params))
    out = fwd(x)
    jax.block_until_ready(out)

    assert out.shape == (2, NUM_CLASSES), out.shape
    assert jnp.all(jnp.isfinite(out))
    print("KERNEL_OK")
</pallas_src>

<mosaic_0001>
module attributes {stable_mosaic.version = 11 : i64} {
  func.func @_conv3x3_kernel(%arg0: i32, %arg1: i32, %arg2: memref<1x18x18x8xbf16, #tpu.memory_space<vmem>>, %arg3: memref<9x8x64xbf16, #tpu.memory_space<vmem>>, %arg4: memref<1x64xf32, #tpu.memory_space<vmem>>, %arg5: memref<1x64xf32, #tpu.memory_space<vmem>>, %arg6: memref<1x16x16x64xbf16, #tpu.memory_space<vmem>>) attributes {dimension_semantics = [#tpu.dimension_semantics<parallel>, #tpu.dimension_semantics<parallel>], iteration_bounds = array<i64: 2, 1>, scalar_prefetch = 0 : i64, scratch_operands = 0 : i64, tpu.core_type = #tpu.core_type<tc>, window_params = [{transform_indices = @transform_0, window_bounds = array<i64: 1, 18, 18, 8>}, {transform_indices = @transform_1, window_bounds = array<i64: 9, 8, 64>}, {transform_indices = @transform_2, window_bounds = array<i64: 1, 64>}, {transform_indices = @transform_3, window_bounds = array<i64: 1, 64>}, {transform_indices = @transform_4, window_bounds = array<i64: 1, 16, 16, 64>}]} {
    %c0 = arith.constant 0 : index
    %c0_0 = arith.constant 0 : index
    %c0_1 = arith.constant 0 : index
    %c0_2 = arith.constant 0 : index
    %0 = vector.load %arg2[%c0, %c0_0, %c0_1, %c0_2] : memref<1x18x18x8xbf16, #tpu.memory_space<vmem>>, vector<1x18x18x8xbf16>
    %1 = vector.shape_cast %0 : vector<1x18x18x8xbf16> to vector<18x18x8xbf16>
    %cst = arith.constant 0.000000e+00 : f32
    %2 = vector.broadcast %cst : f32 to vector<256x64xf32>
    %3 = vector.extract_strided_slice %1 {offsets = [0, 0, 0], sizes = [16, 16, 8], strides = [1, 1, 1]} : vector<18x18x8xbf16> to vector<16x16x8xbf16>
    %4 = vector.shape_cast %3 : vector<16x16x8xbf16> to vector<256x8xbf16>
    %c0_3 = arith.constant 0 : index
    %c0_4 = arith.constant 0 : index
    %c0_5 = arith.constant 0 : index
    %5 = vector.load %arg3[%c0_3, %c0_4, %c0_5] : memref<9x8x64xbf16, #tpu.memory_space<vmem>>, vector<1x8x64xbf16>
    %6 = vector.shape_cast %5 : vector<1x8x64xbf16> to vector<8x64xbf16>
    %cst_6 = arith.constant dense<0.000000e+00> : vector<256x64xf32>
    %7 = tpu.matmul %4, %6, %cst_6 {dimension_numbers = #tpu.dot_dimension_numbers<[1], [0], [0], [1], [0, 0, 1, 1], [], []>} : vector<256x8xbf16>, vector<8x64xbf16>, vector<256x64xf32> -> vector<256x64xf32>
    %8 = arith.addf %2, %7 : vector<256x64xf32>
    %9 = vector.extract_strided_slice %1 {offsets = [0, 1, 0], sizes = [16, 16, 8], strides = [1, 1, 1]} : vector<18x18x8xbf16> to vector<16x16x8xbf16>
    %10 = vector.shape_cast %9 : vector<16x16x8xbf16> to vector<256x8xbf16>
    %c1 = arith.constant 1 : index
    %c0_7 = arith.constant 0 : index
    %c0_8 = arith.constant 0 : index
    %11 = vector.load %arg3[%c1, %c0_7, %c0_8] : memref<9x8x64xbf16, #tpu.memory_space<vmem>>, vector<1x8x64xbf16>
    %12 = vector.shape_cast %11 : vector<1x8x64xbf16> to vector<8x64xbf16>
    %cst_9 = arith.constant dense<0.000000e+00> : vector<256x64xf32>
    %13 = tpu.matmul %10, %12, %cst_9 {dimension_numbers = #tpu.dot_dimension_numbers<[1], [0], [0], [1], [0, 0, 1, 1], [], []>} : vector<256x8xbf16>, vector<8x64xbf16>, vector<256x64xf32> -> vector<256x64xf32>
    %14 = arith.addf %8, %13 : vector<256x64xf32>
    %15 = vector.extract_strided_slice %1 {offsets = [0, 2, 0], sizes = [16, 16, 8], strides = [1, 1, 1]} : vector<18x18x8xbf16> to vector<16x16x8xbf16>
    %16 = vector.shape_cast %15 : vector<16x16x8xbf16> to vector<256x8xbf16>
    %c2 = arith.constant 2 : index
    %c0_10 = arith.constant 0 : index
    %c0_11 = arith.constant 0 : index
    %17 = vector.load %arg3[%c2, %c0_10, %c0_11] : memref<9x8x64xbf16, #tpu.memory_space<vmem>>, vector<1x8x64xbf16>
    %18 = vector.shape_cast %17 : vector<1x8x64xbf16> to vector<8x64xbf16>
    %cst_12 = arith.constant dense<0.000000e+00> : vector<256x64xf32>
    %19 = tpu.matmul %16, %18, %cst_12 {dimension_numbers = #tpu.dot_dimension_numbers<[1], [0], [0], [1], [0, 0, 1, 1], [], []>} : vector<256x8xbf16>, vector<8x64xbf16>, vector<256x64xf32> -> vector<256x64xf32>
    %20 = arith.addf %14, %19 : vector<256x64xf32>
    %21 = vector.extract_strided_slice %1 {offsets = [1, 0, 0], sizes = [16, 16, 8], strides = [1, 1, 1]} : vector<18x18x8xbf16> to vector<16x16x8xbf16>
    %22 = vector.shape_cast %21 : vector<16x16x8xbf16> to vector<256x8xbf16>
    %c3 = arith.constant 3 : index
    %c0_13 = arith.constant 0 : index
    %c0_14 = arith.constant 0 : index
    %23 = vector.load %arg3[%c3, %c0_13, %c0_14] : memref<9x8x64xbf16, #tpu.memory_space<vmem>>, vector<1x8x64xbf16>
    %24 = vector.shape_cast %23 : vector<1x8x64xbf16> to vector<8x64xbf16>
    %cst_15 = arith.constant dense<0.000000e+00> : vector<256x64xf32>
    %25 = tpu.matmul %22, %24, %cst_15 {dimension_numbers = #tpu.dot_dimension_numbers<[1], [0], [0], [1], [0, 0, 1, 1], [], []>} : vector<256x8xbf16>, vector<8x64xbf16>, vector<256x64xf32> -> vector<256x64xf32>
    %26 = arith.addf %20, %25 : vector<256x64xf32>
    %27 = vector.extract_strided_slice %1 {offsets = [1, 1, 0], sizes = [16, 16, 8], strides = [1, 1, 1]} : vector<18x18x8xbf16> to vector<16x16x8xbf16>
    %28 = vector.shape_cast %27 : vector<16x16x8xbf16> to vector<256x8xbf16>
    %c4 = arith.constant 4 : index
    %c0_16 = arith.constant 0 : index
    %c0_17 = arith.constant 0 : index
    %29 = vector.load %arg3[%c4, %c0_16, %c0_17] : memref<9x8x64xbf16, #tpu.memory_space<vmem>>, vector<1x8x64xbf16>
    %30 = vector.shape_cast %29 : vector<1x8x64xbf16> to vector<8x64xbf16>
    %cst_18 = arith.constant dense<0.000000e+00> : vector<256x64xf32>
    %31 = tpu.matmul %28, %30, %cst_18 {dimension_numbers = #tpu.dot_dimension_numbers<[1], [0], [0], [1], [0, 0, 1, 1], [], []>} : vector<256x8xbf16>, vector<8x64xbf16>, vector<256x64xf32> -> vector<256x64xf32>
    %32 = arith.addf %26, %31 : vector<256x64xf32>
    %33 = vector.extract_strided_slice %1 {offsets = [1, 2, 0], sizes = [16, 16, 8], strides = [1, 1, 1]} : vector<18x18x8xbf16> to vector<16x16x8xbf16>
    %34 = vector.shape_cast %33 : vector<16x16x8xbf16> to vector<256x8xbf16>
    %c5 = arith.constant 5 : index
    %c0_19 = arith.constant 0 : index
    %c0_20 = arith.constant 0 : index
    %35 = vector.load %arg3[%c5, %c0_19, %c0_20] : memref<9x8x64xbf16, #tpu.memory_space<vmem>>, vector<1x8x64xbf16>
    %36 = vector.shape_cast %35 : vector<1x8x64xbf16> to vector<8x64xbf16>
    %cst_21 = arith.constant dense<0.000000e+00> : vector<256x64xf32>
    %37 = tpu.matmul %34, %36, %cst_21 {dimension_numbers = #tpu.dot_dimension_numbers<[1], [0], [0], [1], [0, 0, 1, 1], [], []>} : vector<256x8xbf16>, vector<8x64xbf16>, vector<256x64xf32> -> vector<256x64xf32>
    %38 = arith.addf %32, %37 : vector<256x64xf32>
    %39 = vector.extract_strided_slice %1 {offsets = [2, 0, 0], sizes = [16, 16, 8], strides = [1, 1, 1]} : vector<18x18x8xbf16> to vector<16x16x8xbf16>
    %40 = vector.shape_cast %39 : vector<16x16x8xbf16> to vector<256x8xbf16>
    %c6 = arith.constant 6 : index
    %c0_22 = arith.constant 0 : index
    %c0_23 = arith.constant 0 : index
    %41 = vector.load %arg3[%c6, %c0_22, %c0_23] : memref<9x8x64xbf16, #tpu.memory_space<vmem>>, vector<1x8x64xbf16>
    %42 = vector.shape_cast %41 : vector<1x8x64xbf16> to vector<8x64xbf16>
    %cst_24 = arith.constant dense<0.000000e+00> : vector<256x64xf32>
    %43 = tpu.matmul %40, %42, %cst_24 {dimension_numbers = #tpu.dot_dimension_numbers<[1], [0], [0], [1], [0, 0, 1, 1], [], []>} : vector<256x8xbf16>, vector<8x64xbf16>, vector<256x64xf32> -> vector<256x64xf32>
    %44 = arith.addf %38, %43 : vector<256x64xf32>
    %45 = vector.extract_strided_slice %1 {offsets = [2, 1, 0], sizes = [16, 16, 8], strides = [1, 1, 1]} : vector<18x18x8xbf16> to vector<16x16x8xbf16>
    %46 = vector.shape_cast %45 : vector<16x16x8xbf16> to vector<256x8xbf16>
    %c7 = arith.constant 7 : index
    %c0_25 = arith.constant 0 : index
    %c0_26 = arith.constant 0 : index
    %47 = vector.load %arg3[%c7, %c0_25, %c0_26] : memref<9x8x64xbf16, #tpu.memory_space<vmem>>, vector<1x8x64xbf16>
    %48 = vector.shape_cast %47 : vector<1x8x64xbf16> to vector<8x64xbf16>
    %cst_27 = arith.constant dense<0.000000e+00> : vector<256x64xf32>
    %49 = tpu.matmul %46, %48, %cst_27 {dimension_numbers = #tpu.dot_dimension_numbers<[1], [0], [0], [1], [0, 0, 1, 1], [], []>} : vector<256x8xbf16>, vector<8x64xbf16>, vector<256x64xf32> -> vector<256x64xf32>
    %50 = arith.addf %44, %49 : vector<256x64xf32>
    %51 = vector.extract_strided_slice %1 {offsets = [2, 2, 0], sizes = [16, 16, 8], strides = [1, 1, 1]} : vector<18x18x8xbf16> to vector<16x16x8xbf16>
    %52 = vector.shape_cast %51 : vector<16x16x8xbf16> to vector<256x8xbf16>
    %c8 = arith.constant 8 : index
    %c0_28 = arith.constant 0 : index
    %c0_29 = arith.constant 0 : index
    %53 = vector.load %arg3[%c8, %c0_28, %c0_29] : memref<9x8x64xbf16, #tpu.memory_space<vmem>>, vector<1x8x64xbf16>
    %54 = vector.shape_cast %53 : vector<1x8x64xbf16> to vector<8x64xbf16>
    %cst_30 = arith.constant dense<0.000000e+00> : vector<256x64xf32>
    %55 = tpu.matmul %52, %54, %cst_30 {dimension_numbers = #tpu.dot_dimension_numbers<[1], [0], [0], [1], [0, 0, 1, 1], [], []>} : vector<256x8xbf16>, vector<8x64xbf16>, vector<256x64xf32> -> vector<256x64xf32>
    %56 = arith.addf %50, %55 : vector<256x64xf32>
    %c0_31 = arith.constant 0 : index
    %c0_32 = arith.constant 0 : index
    %57 = vector.load %arg4[%c0_31, %c0_32] : memref<1x64xf32, #tpu.memory_space<vmem>>, vector<1x64xf32>
    %58 = vector.broadcast %57 : vector<1x64xf32> to vector<256x64xf32>
    %59 = arith.mulf %56, %58 : vector<256x64xf32>
    %c0_33 = arith.constant 0 : index
    %c0_34 = arith.constant 0 : index
    %60 = vector.load %arg5[%c0_33, %c0_34] : memref<1x64xf32, #tpu.memory_space<vmem>>, vector<1x64xf32>
    %61 = vector.broadcast %60 : vector<1x64xf32> to vector<256x64xf32>
    %62 = arith.addf %59, %61 : vector<256x64xf32>
    %cst_35 = arith.constant 0.000000e+00 : f32
    %63 = vector.broadcast %cst_35 : f32 to vector<256x64xf32>
    %64 = arith.maximumf %62, %63 : vector<256x64xf32>
    %65 = vector.shape_cast %64 : vector<256x64xf32> to vector<1x16x16x64xf32>
    %66 = arith.truncf %65 : vector<1x16x16x64xf32> to vector<1x16x16x64xbf16>
    %c0_36 = arith.constant 0 : index
    %c0_37 = arith.constant 0 : index
    %c0_38 = arith.constant 0 : index
    %c0_39 = arith.constant 0 : index
    %67 = vector.load %arg6[%c0_36, %c0_37, %c0_38, %c0_39] : memref<1x16x16x64xbf16, #tpu.memory_space<vmem>>, vector<1x16x16x64xbf16>
    tpu.vector_store %arg6[%c0_36, %c0_37, %c0_38, %c0_39], %66 {strides = array<i32>} : memref<1x16x16x64xbf16, #tpu.memory_space<vmem>>, vector<1x16x16x64xbf16>,
    return
  }
  func.func @transform_0(%arg0: i32, %arg1: i32) -> (i32, i32, i32, i32) {
    %c0_i32 = arith.constant 0 : i32
    %c0_i32_0 = arith.constant 0 : i32
    %c0_i32_1 = arith.constant 0 : i32
    %c0_i32_2 = arith.constant 0 : i32
    return %arg0, %c0_i32, %c0_i32_0, %c0_i32_1 : i32, i32, i32, i32
  }
  func.func @transform_1(%arg0: i32, %arg1: i32) -> (i32, i32, i32) {
    %c0_i32 = arith.constant 0 : i32
    %c0_i32_0 = arith.constant 0 : i32
    %c0_i32_1 = arith.constant 0 : i32
    return %c0_i32, %c0_i32_0, %arg1 : i32, i32, i32
  }
  func.func @transform_2(%arg0: i32, %arg1: i32) -> (i32, i32) {
    %c0_i32 = arith.constant 0 : i32
    %c0_i32_0 = arith.constant 0 : i32
    return %c0_i32, %arg1 : i32, i32
  }
  func.func @transform_3(%arg0: i32, %arg1: i32) -> (i32, i32) {
    %c0_i32 = arith.constant 0 : i32
    %c0_i32_0 = arith.constant 0 : i32
    return %c0_i32, %arg1 : i32, i32
  }
  func.func @transform_4(%arg0: i32, %arg1: i32) -> (i32, i32, i32, i32) {
    %c0_i32 = arith.constant 0 : i32
    %c0_i32_0 = arith.constant 0 : i32
    %c0_i32_1 = arith.constant 0 : i32
    return %arg0, %c0_i32, %c0_i32_0, %arg1 : i32, i32, i32, i32
  }
}

</mosaic_0001>

<bundles_post_ra>
// kernel: conv3x3_bn_relu.1
= control target key start
LH: loop header
LB: loop body
LE: loop exit
PB: predicated region body
PF: predicated region fallthrough
CT: control target
= control target key end

     0   :  { %9 = vsyncpa [#allocation3], 0  ;;  %s6002_s0 = inlined_call_operand.vmem [shape: bf16[2,18,18,8], index: 0, kind: input, shape index: {}]   ;;  %s6003_s1 = inlined_call_operand.vmem [shape: bf16[9,8,64], index: 1, kind: input, shape index: {}]   ;;  %s6004_s2 = inlined_call_operand.vmem [shape: f32[1,64], index: 2, kind: input, shape index: {}]   ;;  %s6005_s3 = inlined_call_operand.vmem [shape: f32[1,64], index: 3, kind: input, shape index: {}]   ;;  %s6006_s4 = inlined_call_operand.hbm [shape: bf16[2,16,16,64], index: 4, kind: output, shape index: {}]  }
   0x1   :  { %11 = vsyncpa [#allocation3 + $0x1], 0  ;;  %s4327_s15 = smov 0   ;;  %s4329_s16 = smov 0  }
   0x2   :  { %s4331_s17 = smov 0   ;;  %s4333_s18 = smov 0  }
   0x3   :  { %s4335_s19 = smov 0   ;;  %s4337_s20 = smov 0  }
   0x4 LB: > { %s3368_s21 = sadd.s32 4294967295, %s4297_s20   ;;  %s3369_s22 = sadd.s32 4294967294, %s4297_s20   ;;  %s4297_s20 = sphi %s4337_s20, %s17_s20   ;;  %s4293_s19 = sphi %s4335_s19, %s6215_s19   ;;  %s4289_s18 = sphi %s4333_s18, %s6214_s18   ;;  %s4285_s17 = sphi %s4331_s17, %s6213_s17   ;;  %s4281_s16 = sphi %s4329_s16, %s6212_s16   ;;  %s4277_s15 = sphi %s4327_s15, %s6211_s15  }
   0x5   : > { %s29_s23 = sadd.s32 1, %s4293_s19  ;;  %s142_s24 = sadd.s32 1, %s4285_s17 }
   0x6   : > { %p31_p0 = scmp.ge.s32.totalorder %s29_s23, 2  ;;  %p152_p1 = scmp.ne.s32.totalorder %s4285_s17, %s4281_s16 }
   0x7   : > { %p153_p2 = scmp.eq.s32.totalorder %s3368_s21, 1  ;;  %p158_p3 = scmp.ne.s32.totalorder %s4281_s16, %s4277_s15 }
   0x8   : > { %s6217_s23 = smov (%p31_p0, %s29_s23), 0  ;;  %p159_p5 = scmp.eq.s32.totalorder %s3369_s22, 1 }
   0x9   : > { %p4367_p4 = por %p153_p2, %p152_p1  ;;  %s137_s26 = ssub.s32 %s4293_s19, %s6217_s23 }
   0xa   : > { %p3375_p6 = scmp.ge.s32.totalorder %s4297_s20, 1  ;;  %p140_p7 = scmp.eq.s32.totalorder %s137_s26, 0 }
   0xb   : > { %p4374_p8 = por %p159_p5, %p158_p3  ;;  %p204_p9 = scmp.lt.s32.totalorder %s4297_s20, 3 }
   0xc   : > { %s4380_s28 = scalar_select %p140_p7, %s4285_s17, %s142_s24  }
   0xd   : > { %p205_p10 = pnand %p3375_p6, %p204_p9 }
   0xf   : > { %208 = sbr.rel (%p205_p10) target bundleno = 583 (0x247), region = 36 }
  0x14   : > { %v3378_v0 = vld [vmem:[%s6003_s1 + $0x4] sm:$0xf]  ;;  %vm797_vm0 = vcmask 1043456   ;;  %p240_p11 = scmp.lt.s32.totalorder %s4289_s18, 1  ;;  %v310_v2 = vld [vmem:[%s6003_s1] sm:$0xf] }
  0x15   : > { %4136 = vmatprep.subr.msk.bf16.mxu1 %vm797_vm0, %v3378_v0  ;;  %4135 = vmatprep.subr.msk.bf16.mxu0 %vm797_vm0, %v3378_v0  ;;  %v799_v1 = vsel %vm797_vm0, %v3378_v0, 0  ;;  %v3459_v3 = vld [vmem:[%s6003_s1 + $0x8] sm:$0xf]  ;;  %vm311_vm1 = vsmask.f32 3328  ;;  %v4404_v4 = vsel %vm797_vm0, %v310_v2, 0 }
  0x16   : > { %4134 = vmatpush3.bf16.msra.mxu1 %v799_v1  ;;  %3828 = vmatpush3.bf16.msra.mxu0 %v799_v1  ;;  %s241_s7 = scalar_select %p240_p11, %s4289_s18, 1  ;;  %vm312_vm2 = vsmask.f32 7440  ;;  %v4407_v5 = vsel %vm797_vm0, %v3459_v3, 0  ;;  %vm748_vm3 = vcmask 64512   ;;  %v6052_v32 = vmov 0 }
  0x17   : > { %4137 = vmatprep.subr.msk.bf16.mxu1 %vm797_vm0, %v310_v2  ;;  %4138 = vmatprep.subr.msk.bf16.mxu0 %vm797_vm0, %v3459_v3  ;;  %vm4446_vm4 = vmor %vm311_vm1, %vm312_vm2  ;;  %vm1270_vm5 = vcmask 1042432   ;;  %vm1271_vm6 = vcmask 1046532   ;;  %s237_s12 = sand.u32 1, %s4281_s16   ;;  %vm3209_vm8 = vcmask 519168   ;;  %s3673_s24 = sshll.u32 %s4289_s18, 11 }
  0x18   : > { %s4145_s10 = smul.u32 216, %s241_s7  ;;  %v6053_v32 = vsel %vm4446_vm4, 4294967295, %v6052_v32  ;;  %vm4769_vm7 = vmor %vm1270_vm5, %vm1271_vm6  ;;  %s3376_s21 = sshll.u32 %s237_s12, 7 }
  0x19   : > { %6054 = vst [vmem:[#allocation5_spill] sm:$0xff] %v6053_v32  ;;  %s5755_s22 = scalar_lea.vmem [#allocation2], %s3376_s21  ;;  %s5947_s5 = scalar_lea.hbm %s6006_s4, %s3673_s24 }
  0x1a   : > { %s4401_s13 = scalar_lea.vmem %s6002_s0, %s4145_s10  ;;  %s3257_s26 = sshll.u32 %s5755_s22, 4  ;;  %s5949_s26 = int_to_ptr.vmem [resolvable:$true] %s3257_s26 }
  0x1b   : > { %v4410_v6 = vld [vmem:[%s4401_s13] sm:$0xf]  ;;  %v4413_v7 = vld [vmem:[%s4401_s13 + $0x4] sm:$0xf]  ;;  %v4416_v8 = vld [vmem:[%s4401_s13 + $0x8] sm:$0x1] }
  0x1c   : > { %v315_v9 = vshrl.u32 %v4410_v6, 16  ;;  %v318_v10 = vshll.u32 %v4410_v6, 16  ;;  %v324_v11 = vshll.u32 %v4413_v7, 16  ;;  %v328_v12 = vshrl.u32 %v4413_v7, 16  ;;  %v4423_v13 = vld [vmem:[%s4401_s13 + $0x60] sm:$0xf] }
  0x1d   : > { %v334_v14 = vshll.u32 %v4416_v8, 16  ;;  %v4428_v16 = vld [vmem:[%s4401_s13 + $0x64] sm:$0xf]  ;;  %v4431_v17 = vld [vmem:[%s4401_s13 + $0x68] sm:$0x1]  ;;  %v507_v23 = vshrl.u32 %v4423_v13, 16 }
  0x1e   : > { %v317_v18 = vrot.slane %v315_v9, 4  ;;  %v320_v19 = vrot.slane %v318_v10, 5  ;;  %v326_v20 = vrot.slane %v324_v11, 5  ;;  %v330_v21 = vrot.slane %v328_v12, 4  ;;  %v4439_v30 = vld [vmem:[%s4401_s13 + $0xc] sm:$0xf] }
  0x1f   : > { %v336_v22 = vrot.slane %v334_v14, 5  ;;  %v510_v24 = vshll.u32 %v4423_v13, 16  ;;  %v516_v25 = vshll.u32 %v4428_v16, 16  ;;  %v520_v28 = vshrl.u32 %v4428_v16, 16  ;;  %v4442_v31 = vld [vmem:[%s4401_s13 + $0x10] sm:$0xf] }
  0x20   : > { %v321_v26 = vor.u32 %v320_v19, %v317_v18  ;;  %v331_v27 = vor.u32 %v330_v21, %v326_v20  ;;  %v526_v29 = vshll.u32 %v4431_v17, 16  ;;  %v509_v33 = vrot.slane %v507_v23, 4  ;;  %v4453_v42 = vld [vmem:[%s4401_s13 + $0x14] sm:$0x1]  ;;  %v4464_v54 = vld [vmem:[%s4401_s13 + $0x6c] sm:$0xf] }
  0x21   : > { %v512_v34 = vrot.slane %v510_v24, 5  ;;  %v518_v35 = vrot.slane %v516_v25, 5  ;;  %v522_v39 = vrot.slane %v520_v28, 4  ;;  %v339_v43 = vshrl.u32 %v4439_v30, 16  ;;  %6055 = vst [vmem:[#allocation6_spill] sm:$0xff] %v4464_v54  ;;  %s5957_s18 = scalar_lea.sflag [#allocation3], %s237_s12 }
  0x22   : > { %v322_v37 = vrot.slane %v321_v26, 4  ;;  %v332_v38 = vrot.slane %v331_v27, 4  ;;  %v528_v40 = vrot.slane %v526_v29, 5  ;;  %v342_v44 = vshll.u32 %v4439_v30, 16  ;;  %v4468_v59 = vld [vmem:[%s4401_s13 + $0x70] sm:$0xf] }
  0x23   : > { %v513_v41 = vor.u32 %v512_v34, %v509_v33  ;;  %v348_v45 = vshll.u32 %v4442_v31, 16  ;;  %v523_v48 = vor.u32 %v522_v39, %v518_v35  ;;  %v352_v49 = vshrl.u32 %v4442_v31, 16  ;;  %v4476_v0 = vld [vmem:[%s4401_s13 + $0x74] sm:$0x1]  ;;  %v4482_v10 = vld [vmem:[%s4401_s13 + $0x18] sm:$0xf] }
  0x24   : > { %v327_v46 = vsel %vm4446_vm4, %v322_v37, %v326_v20  ;;  %v337_v47 = vsel %vm4446_vm4, %v332_v38, %v336_v22  ;;  %v341_v52 = vrot.slane %v339_v43, 4  ;;  %v344_v53 = vrot.slane %v342_v44, 5  ;;  %6056 = vst [vmem:[#allocation7_spill] sm:$0xff] %v4476_v0  ;;  %v4491_v23 = vld [vmem:[%s4401_s13 + $0x1c] sm:$0xf]  ;;  %s4221_s6 = scalar_lea.vmem %s5949_s26, 2048 }
  0x25   : > { %v3379_v50 = vcombine.low %v327_v46, %v337_v47  ;;  %v514_v51 = vrot.slane %v513_v41, 4  ;;  %v524_v55 = vrot.slane %v523_v48, 4  ;;  %v350_v56 = vrot.slane %v348_v45, 5  ;;  %v4498_v27 = vld [vmem:[%s4401_s13 + $0x20] sm:$0x1]  ;;  %p4222_p12 = scmp.ne.s32.totalorder %s5949_s26, %s4221_s6  ;;  %s4299_s7 = smov [#allocation2]  }
  0x26   : > { %v354_v57 = vrot.slane %v352_v49, 4  ;;  %v358_v58 = vshll.u32 %v4453_v42, 16  ;;  %v345_v61 = vor.u32 %v344_v53, %v341_v52  ;;  %v531_v9 = vshrl.u32 %v4464_v54, 16  ;;  %v4505_v37 = vld [vmem:[%s4401_s13 + $0x78] sm:$0xf]  ;;  %s4225_s8 = sshll.u32 %s4299_s7, 4  ;;  %s4226_s8 = int_to_ptr.vmem [resolvable:$false] %s4225_s8 }
  0x27   : > { %3829 = vmatprep.mubr.msk.bf16.mxu0 %vm748_vm3, %v3379_v50  ;;  %v519_v60 = vsel %vm4446_vm4, %v514_v51, %v518_v35  ;;  %v529_v1 = vsel %vm4446_vm4, %v524_v55, %v528_v40  ;;  %v534_v14 = vshll.u32 %v4464_v54, 16  ;;  %v540_v18 = vshll.u32 %v4468_v59, 16  ;;  %6058 = vst [vmem:[#allocation9_spill] sm:$0xff] %v4505_v37  ;;  %v4513_v43 = vld [vmem:[%s6003_s1 + $0x10] sm:$0xf]  ;;  %p4223_p13 = pnand %p4222_p12, %p4367_p4  ;;  %s4227_s9 = scalar_lea.vmem %s4226_s8, 4096 }
  0x28   : > { %v355_v2 = vor.u32 %v354_v57, %v350_v56  ;;  %v360_v3 = vrot.slane %v358_v58, 5  ;;  %v4484_v11 = vcombine.low %v519_v60, %v529_v1  ;;  %v346_v12 = vrot.slane %v345_v61, 4  ;;  %v4518_v48 = vld [vmem:[%s4401_s13 + $0x7c] sm:$0xf]  ;;  %v4526_v58 = vld [vmem:[%s4401_s13 + $0x80] sm:$0x1]  ;;  %p4228_p1 = scmp.lt.s32.totalorder %s5949_s26, %s4226_s8  ;;  %p4229_p2 = scmp.lt.s32.totalorder %s4227_s9, %s4221_s6 }
  0x29   : > { %v533_v20 = vrot.slane %v531_v9, 4  ;;  %v544_v21 = vshrl.u32 %v4468_v59, 16  ;;  %v550_v22 = vshll.u32 %v4476_v0, 16  ;;  %v536_v25 = vrot.slane %v534_v14, 5  ;;  %6060 = vst [vmem:[#allocation11_spill] sm:$0xff] %v4518_v48  ;;  %6061 = vst [vmem:[#allocation12_spill] sm:$0xff] %v4526_v58  ;;  %p4224_p0 = pneg %p4223_p13 }
  0x2a   : > { %6057 = vst [vmem:[#allocation8_spill] sm:$0xff] %v4484_v11  ;;  %v356_v19 = vrot.slane %v355_v2, 4  ;;  %3845 = vmatprep.mubr.msk.bf16.mxu1 %vm748_vm3, %v4484_v11  ;;  %v351_v24 = vsel %vm4446_vm4, %v346_v12, %v350_v56  ;;  %v542_v26 = vrot.slane %v540_v18, 5  ;;  %v363_v28 = vshrl.u32 %v4482_v10, 16  ;;  %v4540_v18 = vld [vmem:[%s4401_s13 + $0x28] sm:$0xf]  ;;  %p4230_p3 = por %p4229_p2, %p4228_p1 }
  0x2b   : > { %v546_v33 = vrot.slane %v544_v21, 4  ;;  %v552_v34 = vrot.slane %v550_v22, 5  ;;  %v366_v35 = vshll.u32 %v4482_v10, 16  ;;  %v537_v39 = vor.u32 %v536_v25, %v533_v20 }
  0x2c   : > { %v361_v29 = vsel %vm4446_vm4, %v356_v19, %v360_v3  ;;  %v365_v40 = vrot.slane %v363_v28, 4  ;;  %v372_v41 = vshll.u32 %v4491_v23, 16  ;;  %v376_v46 = vshrl.u32 %v4491_v23, 16  ;;  %v4532_v3 = vld [vmem:[%s4401_s13 + $0x24] sm:$0xf]  ;;  %p4231_p5 = pnand %p4230_p3, %p4224_p0 }
  0x2d   : > { %v4507_v38 = vcombine.low %v351_v24, %v361_v29  ;;  %v547_v44 = vor.u32 %v546_v33, %v542_v26  ;;  %v368_v45 = vrot.slane %v366_v35, 5  ;;  %v382_v47 = vshll.u32 %v4498_v27, 16  ;;  %v4548_v24 = vld [vmem:[%s6003_s1 + $0xc] sm:$0xf] }
  0x2e   : > { %v538_v49 = vrot.slane %v537_v39, 4  ;;  %v374_v50 = vrot.slane %v372_v41, 5  ;;  %v555_v51 = vshrl.u32 %v4505_v37, 16  ;;  %v558_v52 = vshll.u32 %v4505_v37, 16  ;;  %v4553_v29 = vld [vmem:[%s4401_s13 + $0x2c] sm:$0x1] }
  0x2f   : > { %6059 = vst [vmem:[#allocation10_spill] sm:$0xff] %v4507_v38  ;;  %3830 = vmatmul.mubr.msk.bf16.vlgmr.msra.gmra.mxu0 %vm748_vm3, %v4507_v38  ;;  %v548_v53 = vrot.slane %v547_v44, 4  ;;  %v369_v55 = vor.u32 %v368_v45, %v365_v40  ;;  %v378_v56 = vrot.slane %v376_v46, 4  ;;  %v384_v57 = vrot.slane %v382_v47, 5  ;;  %v4561_v41 = vld [vmem:[%s4401_s13 + $0x84] sm:$0xf] }
  0x30   : > { %3896 = vmatpush3.bf16.msra.mxu0 %v4407_v5  ;;  %v543_v60 = vsel %vm4446_vm4, %v538_v49, %v542_v26  ;;  %v557_v61 = vrot.slane %v555_v51, 4  ;;  %v560_v1 = vrot.slane %v558_v52, 5  ;;  %v564_v2 = vshll.u32 %v4518_v48, 16  ;;  %v4568_v49 = vld [vmem:[%s4401_s13 + $0x88] sm:$0xf] }
  0x31   : > { %4140 = vmatprep.subr.msk.bf16.mxu0 %vm797_vm0, %v4513_v43  ;;  %v553_v5 = vsel %vm4446_vm4, %v548_v53, %v552_v34  ;;  %v370_v9 = vrot.slane %v369_v55, 4  ;;  %v379_v12 = vor.u32 %v378_v56, %v374_v50  ;;  %v568_v14 = vshrl.u32 %v4518_v48, 16  ;;  %v4708_v38 = vld [vmem:[%s4401_s13 + $0xb0] sm:$0x1]  ;;  %v4730_v48 = vld [vmem:[%s4401_s13 + $0x5c] sm:$0x1] }
  0x32   : > { %v4542_v19 = vcombine.low %v543_v60, %v553_v5  ;;  %v561_v20 = vor.u32 %v560_v1, %v557_v61  ;;  %v566_v21 = vrot.slane %v564_v2, 5  ;;  %v574_v22 = vshll.u32 %v4526_v58, 16  ;;  %6073 = vst [vmem:[#allocation24_spill] sm:$0xff] %v4708_v38 }
  0x33   : > { %v375_v25 = vsel %vm4446_vm4, %v370_v9, %v374_v50  ;;  %v380_v26 = vrot.slane %v379_v12, 4  ;;  %v570_v28 = vrot.slane %v568_v14, 4  ;;  %v387_v33 = vshrl.u32 %v4532_v3, 16  ;;  %v4587_v9 = vld [vmem:[%s4401_s13 + $0x30] sm:$0xf] }
  0x34   : > { %6062 = vst [vmem:[#allocation13_spill] sm:$0xff] %v4542_v19  ;;  %3846 = vmatmul.mubr.msk.bf16.vlgmr.msra.gmra.mxu1 %vm748_vm3, %v4542_v19  ;;  %v562_v34 = vrot.slane %v561_v20, 4  ;;  %v576_v35 = vrot.slane %v574_v22, 5  ;;  %v390_v39 = vshll.u32 %v4532_v3, 16  ;;  %v396_v40 = vshll.u32 %v4540_v18, 16 }
  0x35   : > { %3862 = vmatpush3.bf16.msra.mxu1 %v4404_v4  ;;  %v385_v44 = vsel %vm4446_vm4, %v380_v26, %v384_v57  ;;  %v571_v45 = vor.u32 %v570_v28, %v566_v21  ;;  %v389_v46 = vrot.slane %v387_v33, 4  ;;  %v400_v47 = vshrl.u32 %v4540_v18, 16  ;;  %v4578_v57 = vld [vmem:[%s4401_s13 + $0x8c] sm:$0x1]  ;;  %v4592_v22 = vld [vmem:[%s4401_s13 + $0x34] sm:$0xf] }
  0x36   : > { %v4570_v50 = vcombine.low %v375_v25, %v385_v44  ;;  %v567_v51 = vsel %vm4446_vm4, %v562_v34, %v566_v21  ;;  %v392_v52 = vrot.slane %v390_v39, 5  ;;  %v398_v53 = vrot.slane %v396_v40, 5  ;;  %4139 = vmatprep.subr.msk.bf16.mxu1 %vm797_vm0, %v4548_v24 }
  0x37   : > { %v572_v4 = vrot.slane %v571_v45, 4  ;;  %v402_v55 = vrot.slane %v400_v47, 4  ;;  %v406_v56 = vshll.u32 %v4553_v29, 16  ;;  %v579_v60 = vshrl.u32 %v4561_v41, 16 }
  0x38   : > { %6063 = vst [vmem:[#allocation14_spill] sm:$0xff] %v4570_v50  ;;  %3833 = vmatprep.mubr.msk.bf16.mxu0 %vm748_vm3, %v4570_v50  ;;  %v393_v61 = vor.u32 %v392_v52, %v389_v46  ;;  %v582_v1 = vshll.u32 %v4561_v41, 16  ;;  %v588_v2 = vshll.u32 %v4568_v49, 16  ;;  %v592_v5 = vshrl.u32 %v4568_v49, 16  ;;  %v4603_v46 = vld [vmem:[%s4401_s13 + $0x38] sm:$0x1] }
  0x39   : > { %v577_v12 = vsel %vm4446_vm4, %v572_v4, %v576_v35  ;;  %v403_v14 = vor.u32 %v402_v55, %v398_v53  ;;  %v408_v20 = vrot.slane %v406_v56, 5  ;;  %v581_v21 = vrot.slane %v579_v60, 4  ;;  %v4608_v52 = vld [vmem:[%s4401_s13 + $0x90] sm:$0xf] }
  0x3a   : > { %v4594_v25 = vcombine.low %v567_v51, %v577_v12  ;;  %v394_v26 = vrot.slane %v393_v61, 4  ;;  %v584_v28 = vrot.slane %v582_v1, 5  ;;  %v590_v33 = vrot.slane %v588_v2, 5  ;;  %v4613_v61 = vld [vmem:[%s4401_s13 + $0x94] sm:$0xf] }
  0x3b   : > { %v404_v34 = vrot.slane %v403_v14, 4  ;;  %v594_v39 = vrot.slane %v592_v5, 4  ;;  %v598_v40 = vshll.u32 %v4578_v57, 16  ;;  %v411_v44 = vshrl.u32 %v4587_v9, 16 }
  0x3c   : > { %6064 = vst [vmem:[#allocation15_spill] sm:$0xff] %v4594_v25  ;;  %3849 = vmatprep.mubr.msk.bf16.mxu1 %vm748_vm3, %v4594_v25  ;;  %v399_v35 = vsel %vm4446_vm4, %v394_v26, %v398_v53  ;;  %v585_v45 = vor.u32 %v584_v28, %v581_v21  ;;  %v414_v47 = vshll.u32 %v4587_v9, 16  ;;  %v420_v51 = vshll.u32 %v4592_v22, 16  ;;  %v4659_v25 = vld [vmem:[%s4401_s13 + $0xa0] sm:$0xf] }
  0x3d   : > { %v409_v4 = vsel %vm4446_vm4, %v404_v34, %v408_v20  ;;  %v595_v55 = vor.u32 %v594_v39, %v590_v33  ;;  %v600_v56 = vrot.slane %v598_v40, 5  ;;  %v413_v60 = vrot.slane %v411_v44, 4  ;;  %v4625_v34 = vld [vmem:[%s4401_s13 + $0x98] sm:$0x1]  ;;  %v4630_v44 = vld [vmem:[%s4401_s13 + $0x3c] sm:$0xf] }
  0x3e   : > { %v4615_v53 = vcombine.low %v399_v35, %v409_v4  ;;  %v586_v1 = vrot.slane %v585_v45, 4  ;;  %v416_v2 = vrot.slane %v414_v47, 5  ;;  %v422_v5 = vrot.slane %v420_v51, 5  ;;  %v4635_v4 = vld [vmem:[%s4401_s13 + $0x40] sm:$0xf] }
  0x3f   : > { %v596_v12 = vrot.slane %v595_v55, 4  ;;  %v424_v14 = vshrl.u32 %v4592_v22, 16  ;;  %v430_v21 = vshll.u32 %v4603_v46, 16  ;;  %v603_v20 = vshrl.u32 %v4608_v52, 16 }
  0x40   : > { %6065 = vst [vmem:[#allocation16_spill] sm:$0xff] %v4615_v53  ;;  %3834 = vmatmul.mubr.msk.bf16.gmra.mxu0 %vm748_vm3, %v4615_v53  ;;  %v591_v26 = vsel %vm4446_vm4, %v586_v1, %v590_v33  ;;  %v417_v28 = vor.u32 %v416_v2, %v413_v60  ;;  %v606_v39 = vshll.u32 %v4608_v52, 16  ;;  %v612_v40 = vshll.u32 %v4613_v61, 16 }
  0x41   : > { %v601_v35 = vsel %vm4446_vm4, %v596_v12, %v600_v56  ;;  %v426_v45 = vrot.slane %v424_v14, 4  ;;  %v432_v47 = vrot.slane %v430_v21, 5  ;;  %v605_v51 = vrot.slane %v603_v20, 4  ;;  %v4647_v14 = vld [vmem:[%s4401_s13 + $0x44] sm:$0x1] }
  0x42   : > { %v4637_v33 = vcombine.low %v591_v26, %v601_v35  ;;  %v418_v55 = vrot.slane %v417_v28, 4  ;;  %v608_v60 = vrot.slane %v606_v39, 5  ;;  %v614_v1 = vrot.slane %v612_v40, 5  ;;  %v4652_v26 = vld [vmem:[%s4401_s13 + $0x9c] sm:$0xf] }
  0x43   : > { %v427_v2 = vor.u32 %v426_v45, %v422_v5  ;;  %v616_v36 = vshrl.u32 %v4613_v61, 16  ;;  %v622_v63 = vshll.u32 %v4625_v34, 16  ;;  %v435_v15 = vshrl.u32 %v4630_v44, 16 }
  0x44   : > { %6066 = vst [vmem:[#allocation17_spill] sm:$0xff] %v4637_v33  ;;  %3850 = vmatmul.mubr.msk.bf16.gmra.mxu1 %vm748_vm3, %v4637_v33  ;;  %v423_v56 = vsel %vm4446_vm4, %v418_v55, %v422_v5  ;;  %v609_v12 = vor.u32 %v608_v60, %v605_v51  ;;  %v438_v21 = vshll.u32 %v4630_v44, 16  ;;  %v444_v20 = vshll.u32 %v4635_v4, 16 }
  0x45   : > { %v428_v28 = vrot.slane %v427_v2, 4  ;;  %v618_v39 = vrot.slane %v616_v36, 4  ;;  %v624_v40 = vrot.slane %v622_v63, 5  ;;  %v437_v35 = vrot.slane %v435_v15, 4 }
  0x46   : > { %v610_v45 = vrot.slane %v609_v12, 4  ;;  %v440_v62 = vrot.slane %v438_v21, 5  ;;  %v446_v33 = vrot.slane %v444_v20, 5  ;;  %v448_v5 = vshrl.u32 %v4635_v4, 16  ;;  %v4667_v21 = vld [vmem:[%s4401_s13 + $0xa4] sm:$0x1] }
  0x47   : > { %v433_v51 = vsel %vm4446_vm4, %v428_v28, %v432_v47  ;;  %v619_v55 = vor.u32 %v618_v39, %v614_v1  ;;  %v454_v60 = vshll.u32 %v4647_v14, 16  ;;  %v627_v2 = vshrl.u32 %v4652_v26, 16  ;;  %6068 = vst [vmem:[#allocation19_spill] sm:$0xff] %v4667_v21  ;;  %v4670_v20 = vld [vmem:[%s4401_s13 + $0x48] sm:$0xf] }
  0x48   : > { %v4662_v36 = vcombine.low %v423_v56, %v433_v51  ;;  %v615_v15 = vsel %vm4446_vm4, %v610_v45, %v614_v1  ;;  %v441_v63 = vor.u32 %v440_v62, %v437_v35  ;;  %v450_v12 = vrot.slane %v448_v5, 4 }
  0x49   : > { %v620_v47 = vrot.slane %v619_v55, 4  ;;  %v456_v28 = vrot.slane %v454_v60, 5  ;;  %v629_v39 = vrot.slane %v627_v2, 4  ;;  %v630_v19 = vshll.u32 %v4652_v26, 16  ;;  %v4681_v55 = vld [vmem:[%s4401_s13 + $0x4c] sm:$0xf] }
  0x4a   : > { %6067 = vst [vmem:[#allocation18_spill] sm:$0xff] %v4662_v36  ;;  %3837 = vmatprep.mubr.msk.bf16.mxu0 %vm748_vm3, %v4662_v36  ;;  %v442_v56 = vrot.slane %v441_v63, 4  ;;  %v451_v51 = vor.u32 %v450_v12, %v446_v33  ;;  %v636_v1 = vshll.u32 %v4659_v25, 16  ;;  %v640_v62 = vshrl.u32 %v4659_v25, 16  ;;  %v4689_v36 = vld [vmem:[%s4401_s13 + $0x50] sm:$0x1] }
  0x4b   : > { %v625_v35 = vsel %vm4446_vm4, %v620_v47, %v624_v40  ;;  %v632_v45 = vrot.slane %v630_v19, 5  ;;  %v646_v5 = vshll.u32 %v4667_v21, 16  ;;  %v459_v60 = vshrl.u32 %v4670_v20, 16  ;;  %v4692_v47 = vld [vmem:[%s4401_s13 + $0xa8] sm:$0xf] }
  0x4c   : > { %v4684_v2 = vcombine.low %v615_v15, %v625_v35  ;;  %v447_v63 = vsel %vm4446_vm4, %v442_v56, %v446_v33  ;;  %v452_v12 = vrot.slane %v451_v51, 4  ;;  %v638_v11 = vrot.slane %v636_v1, 5  ;;  %6070 = vst [vmem:[#allocation21_spill] sm:$0xff] %v4692_v47 }
  0x4d   : > { %v633_v53 = vor.u32 %v632_v45, %v629_v39  ;;  %v642_v50 = vrot.slane %v640_v62, 4  ;;  %v648_v40 = vrot.slane %v646_v5, 5  ;;  %v461_v19 = vrot.slane %v459_v60, 4  ;;  %v4705_v45 = vld [vmem:[%s4401_s13 + $0xac] sm:$0xf] }
  0x4e   : > { %6069 = vst [vmem:[#allocation20_spill] sm:$0xff] %v4684_v2  ;;  %3853 = vmatprep.mubr.msk.bf16.mxu1 %vm748_vm3, %v4684_v2  ;;  %v457_v15 = vsel %vm4446_vm4, %v452_v12, %v456_v28  ;;  %v462_v33 = vshll.u32 %v4670_v20, 16  ;;  %v468_v56 = vshll.u32 %v4681_v55, 16  ;;  %v472_v51 = vshrl.u32 %v4681_v55, 16  ;;  %6072 = vst [vmem:[#allocation23_spill] sm:$0xff] %v4705_v45 }
  0x4f   : > { %v4701_v1 = vcombine.low %v447_v63, %v457_v15  ;;  %v634_v39 = vrot.slane %v633_v53, 4  ;;  %v643_v62 = vor.u32 %v642_v50, %v638_v11  ;;  %v478_v35 = vshll.u32 %v4689_v36, 16 }
  0x50   : > { %v464_v5 = vrot.slane %v462_v33, 5  ;;  %v470_v60 = vrot.slane %v468_v56, 5  ;;  %v474_v2 = vrot.slane %v472_v51, 4  ;;  %v651_v28 = vshrl.u32 %v4692_v47, 16  ;;  %v4718_v51 = vld [vmem:[%s4401_s13 + $0x54] sm:$0xf] }
  0x51   : > { %6071 = vst [vmem:[#allocation22_spill] sm:$0xff] %v4701_v1  ;;  %3838 = vmatmul.mubr.msk.bf16.gmra.mxu0 %vm748_vm3, %v4701_v1  ;;  %v639_v53 = vsel %vm4446_vm4, %v634_v39, %v638_v11  ;;  %v644_v50 = vrot.slane %v643_v62, 4  ;;  %v480_v63 = vrot.slane %v478_v35, 5  ;;  %v654_v12 = vshll.u32 %v4692_v47, 16  ;;  %v4725_v62 = vld [vmem:[%s4401_s13 + $0x58] sm:$0xf] }
  0x52   : > { %v465_v15 = vor.u32 %v464_v5, %v461_v19  ;;  %v475_v58 = vor.u32 %v474_v2, %v470_v60  ;;  %v653_v33 = vrot.slane %v651_v28, 4  ;;  %v660_v56 = vshll.u32 %v4705_v45, 16 }
  0x53   : > { %v649_v1 = vsel %vm4446_vm4, %v644_v50, %v648_v40  ;;  %v656_v37 = vrot.slane %v654_v12, 5  ;;  %v664_v11 = vshrl.u32 %v4705_v45, 16  ;;  %v670_v39 = vshll.u32 %v4708_v38, 16 }
  0x54   : > { %v4727_v2 = vcombine.low %v639_v53, %v649_v1  ;;  %v466_v19 = vrot.slane %v465_v15, 4  ;;  %v476_v35 = vrot.slane %v475_v58, 4  ;;  %v662_v5 = vrot.slane %v660_v56, 5 }
  0x55   : > { %v657_v28 = vor.u32 %v656_v37, %v653_v33  ;;  %v666_v0 = vrot.slane %v664_v11, 4  ;;  %v672_v54 = vrot.slane %v670_v39, 5  ;;  %v483_v40 = vshrl.u32 %v4718_v51, 16  ;;  %v4742_v37 = vld [vmem:[%s4401_s13 + $0xb4] sm:$0xf] }
  0x56   : > { %6074 = vst [vmem:[#allocation25_spill] sm:$0xff] %v4727_v2  ;;  %3854 = vmatmul.mubr.msk.bf16.gmra.mxu1 %vm748_vm3, %v4727_v2  ;;  %v471_v50 = vsel %vm4446_vm4, %v466_v19, %v470_v60  ;;  %v481_v1 = vsel %vm4446_vm4, %v476_v35, %v480_v63  ;;  %v486_v58 = vshll.u32 %v4718_v51, 16  ;;  %v492_v53 = vshll.u32 %v4725_v62, 16  ;;  %6075 = vst [vmem:[#allocation26_spill] sm:$0xff] %v4742_v37  ;;  %v4747_v11 = vld [vmem:[%s4401_s13 + $0xb8] sm:$0xf] }
  0x57   : > { %v4744_v12 = vcombine.low %v471_v50, %v481_v1  ;;  %v658_v15 = vrot.slane %v657_v28, 4  ;;  %v667_v33 = vor.u32 %v666_v0, %v662_v5  ;;  %v485_v56 = vrot.slane %v483_v40, 4 }
  0x58   : > { %v488_v39 = vrot.slane %v486_v58, 5  ;;  %v494_v2 = vrot.slane %v492_v53, 5  ;;  %v496_v60 = vshrl.u32 %v4725_v62, 16  ;;  %v502_v63 = vshll.u32 %v4730_v48, 16  ;;  %v4758_v58 = vld [vmem:[%s4401_s13 + $0xbc] sm:$0x1] }
  0x59   : > { %6076 = vst [vmem:[#allocation27_spill] sm:$0xff] %v4744_v12  ;;  %3841 = vmatprep.mubr.msk.bf16.mxu0 %vm748_vm3, %v4744_v12  ;;  %v663_v19 = vsel %vm4446_vm4, %v658_v15, %v662_v5  ;;  %v668_v35 = vrot.slane %v667_v33, 4  ;;  %v675_v28 = vshrl.u32 %v4742_v37, 16  ;;  %v678_v0 = vshll.u32 %v4742_v37, 16 }
  0x5a   : > { %v489_v40 = vor.u32 %v488_v39, %v485_v56  ;;  %v498_v50 = vrot.slane %v496_v60, 4  ;;  %v504_v1 = vrot.slane %v502_v63, 5  ;;  %v684_v53 = vshll.u32 %v4747_v11, 16 }
  0x5b   : > { %v673_v38 = vsel %vm4446_vm4, %v668_v35, %v672_v54  ;;  %v677_v47 = vrot.slane %v675_v28, 4  ;;  %v680_v12 = vrot.slane %v678_v0, 5  ;;  %v688_v45 = vshrl.u32 %v4747_v11, 16 }
  0x5c   : > { %v4764_v5 = vcombine.low %v663_v19, %v673_v38  ;;  %v490_v15 = vrot.slane %v489_v40, 4  ;;  %v499_v33 = vor.u32 %v498_v50, %v494_v2  ;;  %v686_v21 = vrot.slane %v684_v53, 5 }
  0x5d   : > { %v681_v37 = vor.u32 %v680_v12, %v677_v47  ;;  %v690_v56 = vrot.slane %v688_v45, 4  ;;  %v694_v39 = vshll.u32 %v4758_v58, 16  ;;  %v3443_v54 = vrot.slane %v4410_v6, 9 }
  0x5e   : > { %3857 = vmatprep.mubr.msk.bf16.mxu1 %vm748_vm3, %v4764_v5  ;;  %v495_v38 = vsel %vm4446_vm4, %v490_v15, %v494_v2  ;;  %v500_v63 = vrot.slane %v499_v33, 4  ;;  %v1275_v47 = vrot.slane %v4413_v7, 5  ;;  %v4781_v45 = vcombine.low %v4439_v30, %v4442_v31 }
  0x5f   : > { %v682_v12 = vrot.slane %v681_v37, 4  ;;  %v691_v19 = vor.u32 %v690_v56, %v686_v21  ;;  %v696_v35 = vrot.slane %v694_v39, 5  ;;  %v3444_v28 = vrot.slane %v4439_v30, 9 }
  0x60   : > { %v505_v0 = vsel %vm4446_vm4, %v500_v63, %v504_v1  ;;  %v1276_v40 = vsel %vm4769_vm7, %v3443_v54, %v1275_v47  ;;  %v1277_v50 = vrot.slane %v1275_v47, 4  ;;  %v6079_v2 = vrot.slane %v4442_v31, 5 }
  0x61   : > { %v4790_v15 = vcombine.low %v495_v38, %v505_v0  ;;  %v687_v33 = vsel %vm4446_vm4, %v682_v12, %v686_v21  ;;  %v692_v37 = vrot.slane %v691_v19, 4  ;;  %v6081_v1 = vrot.slane %v4416_v8, 5 }
  0x62   : > { %v1284_v53 = vrot.slane %v6079_v2, 4  ;;  %v6080_v56 = vmov %v6079_v2  ;;  %v6082_v54 = vrot.slane %v4453_v42, 5  ;;  %v4808_v63 = vcombine.low %v4482_v10, %v4491_v23 }
  0x63   : > { %v1283_v30 = vsel %vm4769_vm7, %v3444_v28, %v6080_v56  ;;  %v1279_v39 = vsel %vm4769_vm7, %v1277_v50, %v6081_v1  ;;  %v3445_v21 = vrot.slane %v4482_v10, 9  ;;  %3842 = vmatmul.mubr.msk.bf16.gmra.mxu0 %vm748_vm3, %v4790_v15  ;;  %v697_v8 = vsel %vm4446_vm4, %v692_v37, %v696_v35 }
  0x64   : > { %v1286_v38 = vsel %vm4769_vm7, %v1284_v53, %v6082_v54  ;;  %v3460_v31 = vcombine.low %v1276_v40, %v1279_v39  ;;  %v1289_v42 = vrot.slane %v4491_v23, 5  ;;  %v4818_v12 = vcombine.low %v687_v33, %v697_v8 }
  0x65   : > { %v4815_v47 = vcombine.low %v1283_v30, %v1286_v38  ;;  %v1292_v19 = vrot.slane %v4498_v27, 5  ;;  %v1296_v0 = vrot.slane %v4540_v18, 5  ;;  %v3446_v35 = vrot.slane %v4532_v3, 9 }
  0x66   : > { %6083 = vst [vmem:[#allocation28_spill] sm:$0xff] %v4818_v12  ;;  %3897 = vmatprep.mubr.msk.bf16.mxu0 %vm748_vm3, %v3460_v31  ;;  %v1290_v10 = vsel %vm4769_vm7, %v3445_v21, %v1289_v42  ;;  %v1291_v28 = vrot.slane %v1289_v42, 4  ;;  %3858 = vmatmul.mubr.msk.bf16.gmra.mxu1 %vm748_vm3, %v4818_v12  ;;  %v3447_v40 = vrot.slane %v4587_v9, 9  ;;  %v1303_v23 = vrot.slane %v4592_v22, 5 }
  0x67   : > { %v6084_v27 = vcombine.low %v4410_v6, %v4413_v7  ;;  %v1298_v2 = vrot.slane %v1296_v0, 4  ;;  %v1299_v53 = vrot.slane %v4553_v29, 5  ;;  %v1306_v33 = vrot.slane %v4603_v46, 5  ;;  %v4853_v46 = vld [vmem:[%s6003_s1 + $0x18] sm:$0xf] }
  0x68   : > { %v1293_v50 = vsel %vm4769_vm7, %v1291_v28, %v1292_v19  ;;  %v1305_v56 = vrot.slane %v1303_v23, 4  ;;  %v1918_v30 = vsel %vm797_vm0, %v4513_v43, 0  ;;  %v1310_v1 = vrot.slane %v4635_v4, 5  ;;  %v4870_v19 = vld [vmem:[%s6003_s1 + $0x14] sm:$0xf] }
  0x69   : > { %3863 = vmatprep.mubr.msk.bf16.mxu1 %vm748_vm3, %v6084_v27  ;;  %v4838_v37 = vcombine.low %v1290_v10, %v1293_v50  ;;  %v1690_v6 = vsel %vm797_vm0, %v4548_v24, 0  ;;  %v1297_v7 = vsel %vm4769_vm7, %v3446_v35, %v1296_v0  ;;  %v1304_v39 = vsel %vm4769_vm7, %v3447_v40, %v1303_v23 }
  0x6a   : > { %v1317_v29 = vrot.slane %v4681_v55, 5  ;;  %v1300_v43 = vsel %vm4769_vm7, %v1298_v2, %v1299_v53  ;;  %v1307_v24 = vsel %vm4769_vm7, %v1305_v56, %v1306_v33  ;;  %v3448_v54 = vrot.slane %v4630_v44, 9 }
  0x6b   : > { %3898 = vmatmul.mubr.msk.bf16.vlgmr.msra.gmra.mxu0 %vm748_vm3, %v4815_v47  ;;  %v1313_v38 = vrot.slane %v4647_v14, 5  ;;  %v1312_v21 = vrot.slane %v1310_v1, 4  ;;  %v3449_v8 = vrot.slane %v4670_v20, 9  ;;  %v1320_v42 = vrot.slane %v4689_v36, 5 }
  0x6c   : > { %3964 = vmatpush3.bf16.msra.mxu0 %v1918_v30  ;;  %3901 = vmatprep.mubr.msk.bf16.mxu0 %vm748_vm3, %v4838_v37  ;;  %v1319_v31 = vrot.slane %v1317_v29, 4  ;;  %v4878_v14 = vcombine.low %v1297_v7, %v1300_v43  ;;  %v4880_v10 = vcombine.low %v1304_v39, %v1307_v24  ;;  %v1311_v36 = vsel %vm4769_vm7, %v3448_v54, %v1310_v1 }
  0x6d   : > { %4142 = vmatprep.subr.msk.bf16.mxu0 %vm797_vm0, %v4853_v46  ;;  %v1314_v28 = vsel %vm4769_vm7, %v1312_v21, %v1313_v38  ;;  %v1318_v0 = vsel %vm4769_vm7, %v3449_v8, %v1317_v29  ;;  %v1324_v40 = vrot.slane %v4725_v62, 5  ;;  %v1334_v23 = vrot.slane %v4431_v17, 5  ;;  %v6085_v8 = vld [vmem:[#allocation19_spill] sm:$0xff] }
  0x6e   : > { %3864 = vmatmul.mubr.msk.bf16.vlgmr.msra.gmra.mxu1 %vm748_vm3, %v4781_v45  ;;  %v1321_v35 = vsel %vm4769_vm7, %v1319_v31, %v1320_v42  ;;  %v3450_v27 = vrot.slane %v4718_v51, 9  ;;  %v3451_v50 = vrot.slane %v4423_v13, 9  ;;  %v1331_v2 = vrot.slane %v4428_v16, 5  ;;  %v6086_v42 = vld [vmem:[#allocation23_spill] sm:$0xff] }
  0x6f   : > { %3930 = vmatpush3.bf16.msra.mxu1 %v1690_v6  ;;  %3867 = vmatprep.mubr.msk.bf16.mxu1 %vm748_vm3, %v4808_v63  ;;  %v4899_v53 = vcombine.low %v4532_v3, %v4540_v18  ;;  %v4903_v33 = vcombine.low %v4587_v9, %v4592_v22  ;;  %v4907_v56 = vcombine.low %v4630_v44, %v4635_v4  ;;  %v1327_v3 = vrot.slane %v4730_v48, 5 }
  0x70   : > { %4141 = vmatprep.subr.msk.bf16.mxu1 %vm797_vm0, %v4870_v19  ;;  %v4911_v17 = vcombine.low %v4670_v20, %v4681_v55  ;;  %v4915_v30 = vcombine.low %v1311_v36, %v1314_v28  ;;  %v4917_v1 = vcombine.low %v1318_v0, %v1321_v35  ;;  %v4922_v18 = vcombine.low %v4561_v41, %v4568_v49  ;;  %v6087_v36 = vld [vmem:[#allocation21_spill] sm:$0xff] }
  0x71   : > { %v1326_v9 = vrot.slane %v1324_v40, 4  ;;  %v3454_v22 = vrot.slane %v4561_v41, 9  ;;  %v1352_v44 = vrot.slane %v4568_v49, 5  ;;  %v1355_v4 = vrot.slane %v4578_v57, 5 }
  0x72   : > { %v1325_v20 = vsel %vm4769_vm7, %v3450_v27, %v1324_v40  ;;  %v1332_v48 = vsel %vm4769_vm7, %v3451_v50, %v1331_v2  ;;  %v1333_v55 = vrot.slane %v1331_v2, 4  ;;  %v4935_v6 = vcombine.low %v4608_v52, %v4613_v61  ;;  %v6088_v40 = vld [vmem:[#allocation24_spill] sm:$0xff] }
  0x73   : > { %3902 = vmatmul.mubr.msk.bf16.gmra.mxu0 %vm748_vm3, %v4878_v14  ;;  %v1353_v41 = vsel %vm4769_vm7, %v3454_v22, %v1352_v44  ;;  %v1354_v49 = vrot.slane %v1352_v44, 4  ;;  %v3455_v57 = vrot.slane %v4608_v52, 9  ;;  %v1359_v7 = vrot.slane %v4613_v61, 5 }
  0x74   : > { %3905 = vmatprep.mubr.msk.bf16.mxu0 %vm748_vm3, %v4880_v10  ;;  %v1338_v39 = vrot.slane %v4468_v59, 5  ;;  %v1362_v29 = vrot.slane %v4625_v34, 5  ;;  %v4949_v43 = vcombine.low %v4652_v26, %v4659_v25  ;;  %v3456_v24 = vrot.slane %v4652_v26, 9 }
  0x75   : > { %v1328_v54 = vsel %vm4769_vm7, %v1326_v9, %v1327_v3  ;;  %v1356_v52 = vsel %vm4769_vm7, %v1354_v49, %v1355_v4  ;;  %v1360_v61 = vsel %vm4769_vm7, %v3455_v57, %v1359_v7  ;;  %v1361_v38 = vrot.slane %v1359_v7, 4  ;;  %v6089_v3 = vld [vmem:[#allocation26_spill] sm:$0xff]  ;;  %v6090_v57 = vld [vmem:[#allocation11_spill] sm:$0xff] }
  0x76   : > { %3868 = vmatmul.mubr.msk.bf16.gmra.mxu1 %vm748_vm3, %v4899_v53  ;;  %v4958_v21 = vcombine.low %v1353_v41, %v1356_v52  ;;  %v1366_v34 = vrot.slane %v4659_v25, 5  ;;  %v1369_v31 = vrot.slane %v6085_v8, 5  ;;  %v4964_v28 = vcombine.low %v6087_v36, %v6086_v42 }
  0x77   : > { %3871 = vmatprep.mubr.msk.bf16.mxu1 %vm748_vm3, %v4903_v33  ;;  %v1363_v26 = vsel %vm4769_vm7, %v1361_v38, %v1362_v29  ;;  %v3457_v0 = vrot.slane %v6087_v36, 9  ;;  %v1373_v35 = vrot.slane %v6086_v42, 5  ;;  %v1376_v27 = vrot.slane %v6088_v40, 5  ;;  %v6092_v42 = vld [vmem:[#allocation7_spill] sm:$0xff] }
  0x78   : > { %v4973_v50 = vcombine.low %v1360_v61, %v1363_v26  ;;  %v1367_v25 = vsel %vm4769_vm7, %v3456_v24, %v1366_v34  ;;  %v1368_v2 = vrot.slane %v1366_v34, 4  ;;  %v4979_v9 = vcombine.low %v6089_v3, %v4747_v11 }
  0x79   : > { %v1374_v22 = vsel %vm4769_vm7, %v3457_v0, %v1373_v35  ;;  %v1375_v44 = vrot.slane %v1373_v35, 4  ;;  %v3458_v4 = vrot.slane %v6089_v3, 9  ;;  %v1380_v41 = vrot.slane %v4747_v11, 5  ;;  %v6093_v0 = vld [vmem:[#allocation9_spill] sm:$0xff] }
  0x7a   : > { %v1335_v49 = vsel %vm4769_vm7, %v1333_v55, %v1334_v23  ;;  %v1345_v7 = vrot.slane %v6090_v57, 5  ;;  %v1370_v29 = vsel %vm4769_vm7, %v1368_v2, %v1369_v31  ;;  %v1383_v24 = vrot.slane %v4758_v58, 5  ;;  %v6091_v55 = vld [vmem:[#allocation6_spill] sm:$0xff] }
  0x7b   : > { %3906 = vmatmul.mubr.msk.bf16.gmra.mxu0 %vm748_vm3, %v4915_v30  ;;  %v4995_v52 = vcombine.low %v1367_v25, %v1370_v29  ;;  %v1377_v61 = vsel %vm4769_vm7, %v1375_v44, %v1376_v27  ;;  %v1381_v11 = vsel %vm4769_vm7, %v3458_v4, %v1380_v41  ;;  %v1382_v38 = vrot.slane %v1380_v41, 4  ;;  %v6094_v27 = vld [vmem:[#allocation12_spill] sm:$0xff]  ;;  %v5082_v4 = vld [vmem:[%s4401_s13 + $0xc0] sm:$0xf]  ;;  %v306_v41 = vld [vmem:[%s4401_s13 + $0xc8] sm:$0x1] }
  0x7c   : > { %3909 = vmatprep.mubr.msk.bf16.mxu0 %vm748_vm3, %v4917_v1  ;;  %v5003_v23 = vcombine.low %v1325_v20, %v1328_v54  ;;  %v3452_v34 = vrot.slane %v6091_v55, 9  ;;  %v5006_v58 = vcombine.low %v1374_v22, %v1377_v61  ;;  %v5008_v8 = vcombine.low %v1332_v48, %v1335_v49  ;;  %v6095_v61 = vld [vmem:[#allocation10_spill] sm:$0xff] }
  0x7d   : > { %v1340_v31 = vrot.slane %v1338_v39, 4  ;;  %v1341_v36 = vrot.slane %v6092_v42, 5  ;;  %v1384_v26 = vsel %vm4769_vm7, %v1382_v38, %v1383_v24  ;;  %v3453_v35 = vrot.slane %v6093_v0, 9  ;;  %v6097_v42 = vld [vmem:[#allocation16_spill] sm:$0xff] }
  0x7e   : > { %3872 = vmatmul.mubr.msk.bf16.gmra.mxu1 %vm748_vm3, %v4907_v56  ;;  %v1347_v40 = vrot.slane %v1345_v7, 4  ;;  %v1348_v25 = vrot.slane %v6094_v27, 5  ;;  %v5015_v2 = vcombine.low %v1381_v11, %v1384_v26  ;;  %v5019_v20 = vcombine.low %v4718_v51, %v4725_v62  ;;  %v6101_v26 = vld [vmem:[#allocation8_spill] sm:$0xff] }
  0x7f   : > { %3875 = vmatprep.mubr.msk.bf16.mxu1 %vm748_vm3, %v4911_v17  ;;  %v5025_v48 = vcombine.low %v4423_v13, %v4428_v16  ;;  %v1339_v54 = vsel %vm4769_vm7, %v3452_v34, %v1338_v39  ;;  %v1342_v3 = vsel %vm4769_vm7, %v1340_v31, %v1341_v36  ;;  %v1346_v51 = vsel %vm4769_vm7, %v3453_v35, %v1345_v7  ;;  %v6096_v34 = vld [vmem:[#allocation14_spill] sm:$0xff]  ;;  %v6100_v36 = vld [vmem:[#allocation27_spill] sm:$0xff] }
  0x80   : > { %v1349_v62 = vsel %vm4769_vm7, %v1347_v40, %v1348_v25  ;;  %v5041_v13 = vcombine.low %v1339_v54, %v1342_v3  ;;  %v5047_v39 = vcombine.low %v6091_v55, %v4468_v59  ;;  %v5053_v22 = vcombine.low %v6093_v0, %v6090_v57  ;;  %v5076_v59 = vld [vmem:[%s4401_s13 + $0xc4] sm:$0xf]  ;;  %v3584_v55 = vld [vmem:[%s6003_s1 + $0x20] sm:$0xf]  ;;  %v6103_v35 = vld [vmem:[#allocation15_spill] sm:$0xff] }
  0x81   : > { %v5043_v16 = vcombine.low %v1346_v51, %v1349_v62  ;;  %v2116_v44 = vrot.slane %v5076_v59, 5  ;;  %v3528_v49 = vrot.slane %v5082_v4, 9  ;;  %v2119_v7 = vrot.slane %v306_v41, 5  ;;  %v6102_v0 = vld [vmem:[#allocation13_spill] sm:$0xff] }
  0x82   : > { %v2336_v38 = vsel %vm797_vm0, %v4853_v46, 0  ;;  %v2130_v31 = vsel %vm797_vm0, %v4870_v19, 0  ;;  %v6098_v46 = vld [vmem:[#allocation18_spill] sm:$0xff]  ;;  %v6104_v40 = vld [vmem:[#allocation17_spill] sm:$0xff]  ;;  %v1886_v27 = vshrl.u32 %v5082_v4, 16  ;;  %v1889_v25 = vshll.u32 %v5082_v4, 16 }
  0x83   : > { %3910 = vmatmul.mubr.msk.bf16.gmra.mxu0 %vm748_vm3, %v5003_v23  ;;  %v2118_v57 = vrot.slane %v2116_v44, 4  ;;  %v2117_v29 = vsel %vm4769_vm7, %v3528_v49, %v2116_v44  ;;  %v6099_v19 = vld [vmem:[#allocation22_spill] sm:$0xff]  ;;  %v1899_v54 = vshrl.u32 %v5076_v59, 16  ;;  %v1895_v3 = vshll.u32 %v5076_v59, 16 }
  0x84   : > { %3913 = vmatprep.mubr.msk.bf16.mxu0 %vm748_vm3, %v5008_v8  ;;  %v1888_v51 = vrot.slane %v1886_v27, 4  ;;  %v1891_v62 = vrot.slane %v1889_v25, 5 }
  0x85   : > { %v2120_v24 = vsel %vm4769_vm7, %v2118_v57, %v2119_v7  ;;  %v1897_v44 = vrot.slane %v1895_v3, 5  ;;  %v1901_v49 = vrot.slane %v1899_v54, 4  ;;  %v6105_v57 = vld [vmem:[#allocation20_spill] sm:$0xff]  ;;  %v6106_v7 = vld [vmem:[#allocation25_spill] sm:$0xff]  ;;  %v3493_v3 = vcombine.low %v5082_v4, %v5076_v59 }
  0x86   : > { %3876 = vmatmul.mubr.msk.bf16.gmra.mxu1 %vm748_vm3, %v5019_v20  ;;  %v5094_v11 = vcombine.low %v2117_v29, %v2120_v24  ;;  %v1892_v29 = vor.u32 %v1891_v62, %v1888_v51  ;;  %v2776_v51 = vsel %vm797_vm0, %v3584_v55, 0 }
  0x87   : > { %3879 = vmatprep.mubr.msk.bf16.mxu1 %vm748_vm3, %v5025_v48  ;;  %v1902_v24 = vor.u32 %v1901_v49, %v1897_v44 }
  0x8b   : > { %3914 = vmatmul.mubr.msk.bf16.gmra.mxu0 %vm748_vm3, %v5041_v13 }
  0x8c   : > { %3917 = vmatprep.mubr.msk.bf16.mxu0 %vm748_vm3, %v5043_v16 }
  0x8e   : > { %3880 = vmatmul.mubr.msk.bf16.gmra.mxu1 %vm748_vm3, %v5047_v39 }
  0x8f   : > { %3883 = vmatprep.mubr.msk.bf16.mxu1 %vm748_vm3, %v5053_v22 }
  0x93   : > { %3918 = vmatmul.mubr.msk.bf16.gmra.mxu0 %vm748_vm3, %v4958_v21 }
  0x94   : > { %3921 = vmatprep.mubr.msk.bf16.mxu0 %vm748_vm3, %v4973_v50 }
  0x96   : > { %3884 = vmatmul.mubr.msk.bf16.gmra.mxu1 %vm748_vm3, %v4922_v18 }
  0x97   : > { %3887 = vmatprep.mubr.msk.bf16.mxu1 %vm748_vm3, %v4935_v6 }
  0x9b   : > { %3922 = vmatmul.mubr.msk.bf16.gmra.mxu0 %vm748_vm3, %v4995_v52 }
  0x9c   : > { %3925 = vmatprep.mubr.msk.bf16.mxu0 %vm748_vm3, %v5006_v58 }
  0x9e   : > { %3888 = vmatmul.mubr.msk.bf16.gmra.mxu1 %vm748_vm3, %v4949_v43 }
  0x9f   : > { %3891 = vmatprep.mubr.msk.bf16.mxu1 %vm748_vm3, %v4964_v28 }
  0xa3   : > { %3926 = vmatmul.mubr.msk.bf16.gmra.mxu0 %vm748_vm3, %v5015_v2 }
  0xa4   : > { %3965 = vmatprep.mubr.msk.bf16.mxu0 %vm748_vm3, %v6095_v61  ;;  %v1905_v61 = vshll.u32 %v306_v41, 16 }
  0xa6   : > { %3892 = vmatmul.mubr.msk.bf16.gmra.mxu1 %vm748_vm3, %v4979_v9  ;;  %v1907_v27 = vrot.slane %v1905_v61, 5  ;;  %v5286_v61 = vld [vmem:[%s4401_s13 + $0xd0] sm:$0xf] }
  0xa7   : > { %3931 = vmatprep.mubr.msk.bf16.mxu1 %vm748_vm3, %v4781_v45  ;;  %v3565_v45 = vld [vmem:[%s6003_s1 + $0x1c] sm:$0xf] }
  0xa8   : > { %v2564_v62 = vsel %vm797_vm0, %v3565_v45, 0 }
  0xab   : > { %3966 = vmatmul.mubr.msk.bf16.vlgmr.msra.gmra.mxu0 %vm748_vm3, %v6096_v34 }
  0xac   : > { %4032 = vmatpush3.bf16.msra.mxu0 %v2336_v38  ;;  %3969 = vmatprep.mubr.msk.bf16.mxu0 %vm748_vm3, %v6097_v42  ;;  %v1893_v38 = vrot.slane %v1892_v29, 4 }
  0xad   : > { %4144 = vmatprep.subr.msk.bf16.mxu0 %vm797_vm0, %v3584_v55 }
  0xae   : > { %3932 = vmatmul.mubr.msk.bf16.vlgmr.msra.gmra.mxu1 %vm748_vm3, %v4808_v63  ;;  %v1898_v25 = vsel %vm4446_vm4, %v1893_v38, %v1897_v44 }
  0xaf   : > { %3998 = vmatpush3.bf16.msra.mxu1 %v2130_v31  ;;  %3935 = vmatprep.mubr.msk.bf16.mxu1 %vm748_vm3, %v4899_v53  ;;  %v1903_v31 = vrot.slane %v1902_v24, 4 }
  0xb0   : > { %4143 = vmatprep.subr.msk.bf16.mxu1 %vm797_vm0, %v3565_v45 }
  0xb1   : > { %v1908_v41 = vsel %vm4446_vm4, %v1903_v31, %v1907_v27 }
  0xb2   : > { %v5176_v54 = vcombine.low %v1898_v25, %v1908_v41 }
  0xb3   : > { %3970 = vmatmul.mubr.msk.bf16.gmra.mxu0 %vm748_vm3, %v6098_v46 }
  0xb4   : > { %3973 = vmatprep.mubr.msk.bf16.mxu0 %vm748_vm3, %v6099_v19  ;;  %6107 = vst [vmem:[#allocation19_spill] sm:$0xff] %v5176_v54 }
  0xb6   : > { %3936 = vmatmul.mubr.msk.bf16.gmra.mxu1 %vm748_vm3, %v4903_v33 }
  0xb7   : > { %3939 = vmatprep.mubr.msk.bf16.mxu1 %vm748_vm3, %v4907_v56 }
  0xbb   : > { %3974 = vmatmul.mubr.msk.bf16.gmra.mxu0 %vm748_vm3, %v6100_v36 }
  0xbc   : > { %3977 = vmatprep.mubr.msk.bf16.mxu0 %vm748_vm3, %v4790_v15 }
  0xbe   : > { %3940 = vmatmul.mubr.msk.bf16.gmra.mxu1 %vm748_vm3, %v4911_v17 }
  0xbf   : > { %3943 = vmatprep.mubr.msk.bf16.mxu1 %vm748_vm3, %v5019_v20 }
  0xc3   : > { %3978 = vmatmul.mubr.msk.bf16.gmra.mxu0 %vm748_vm3, %v6101_v26 }
  0xc4   : > { %3981 = vmatprep.mubr.msk.bf16.mxu0 %vm748_vm3, %v6102_v0 }
  0xc6   : > { %3944 = vmatmul.mubr.msk.bf16.gmra.mxu1 %vm748_vm3, %v5025_v48 }
  0xc7   : > { %3947 = vmatprep.mubr.msk.bf16.mxu1 %vm748_vm3, %v5047_v39 }
  0xcb   : > { %3982 = vmatmul.mubr.msk.bf16.gmra.mxu0 %vm748_vm3, %v6103_v35 }
  0xcc   : > { %3985 = vmatprep.mubr.msk.bf16.mxu0 %vm748_vm3, %v6104_v40 }
  0xce   : > { %3948 = vmatmul.mubr.msk.bf16.gmra.mxu1 %vm748_vm3, %v5053_v22 }
  0xcf   : > { %3951 = vmatprep.mubr.msk.bf16.mxu1 %vm748_vm3, %v4922_v18 }
  0xd3   : > { %3986 = vmatmul.mubr.msk.bf16.gmra.mxu0 %vm748_vm3, %v6105_v57 }
  0xd4   : > { %3989 = vmatprep.mubr.msk.bf16.mxu0 %vm748_vm3, %v6106_v7 }
  0xd6   : > { %3952 = vmatmul.mubr.msk.bf16.gmra.mxu1 %vm748_vm3, %v4935_v6 }
  0xd7   : > { %3955 = vmatprep.mubr.msk.bf16.mxu1 %vm748_vm3, %v4949_v43 }
  0xdb   : > { %3990 = vmatmul.mubr.msk.bf16.gmra.mxu0 %vm748_vm3, %v4764_v5 }
  0xdc   : > { %3993 = vmatprep.mubr.msk.bf16.mxu0 %vm748_vm3, %v4818_v12 }
  0xde   : > { %3956 = vmatmul.mubr.msk.bf16.gmra.mxu1 %vm748_vm3, %v4964_v28 }
  0xdf   : > { %3959 = vmatprep.mubr.msk.bf16.mxu1 %vm748_vm3, %v4979_v9 }
  0xe3   : > { %3994 = vmatmul.mubr.msk.bf16.gmra.mxu0 %vm748_vm3, %v5176_v54 }
  0xe4   : > { %4033 = vmatprep.mubr.msk.bf16.mxu0 %vm748_vm3, %v4808_v63 }
  0xe6   : > { %3960 = vmatmul.mubr.msk.bf16.gmra.mxu1 %vm748_vm3, %v3493_v3 }
  0xe7   : > { %3999 = vmatprep.mubr.msk.bf16.mxu1 %vm748_vm3, %v4815_v47 }
  0xeb   : > { %4034 = vmatmul.mubr.msk.bf16.vlgmr.msra.gmra.mxu0 %vm748_vm3, %v4899_v53 }
  0xec   : > { %4100 = vmatpush3.bf16.msra.mxu0 %v2776_v51  ;;  %4037 = vmatprep.mubr.msk.bf16.mxu0 %vm748_vm3, %v4903_v33 }
  0xee   : > { %4000 = vmatmul.mubr.msk.bf16.vlgmr.msra.gmra.mxu1 %vm748_vm3, %v4838_v37 }
  0xef   : > { %4066 = vmatpush3.bf16.msra.mxu1 %v2564_v62  ;;  %4003 = vmatprep.mubr.msk.bf16.mxu1 %vm748_vm3, %v4878_v14  ;;  %v5199_v63 = vpop.f32.mrf.mxu0 }
  0xf1   : > { %v5209_v53 = vpop.f32.mrf.mxu0 }
  0xf3   : > { %4038 = vmatmul.mubr.msk.bf16.gmra.mxu0 %vm748_vm3, %v4907_v56  ;;  %v5215_v56 = vpop.f32.mrf.mxu0 }
  0xf4   : > { %4041 = vmatprep.mubr.msk.bf16.mxu0 %vm748_vm3, %v4911_v17  ;;  %v5205_v47 = vpop.f32.mrf.mxu1 }
  0xf5   : > { %v5225_v59 = vpop.f32.mrf.mxu0 }
  0xf6   : > { %4004 = vmatmul.mubr.msk.bf16.gmra.mxu1 %vm748_vm3, %v4880_v10  ;;  %v5211_v33 = vpop.f32.mrf.mxu1 }
  0xf7   : > { %4007 = vmatprep.mubr.msk.bf16.mxu1 %vm748_vm3, %v4915_v30 }
  0xf8   : > { %v5221_v17 = vpop.f32.mrf.mxu1 }
  0xfa   : > { %v5227_v4 = vpop.f32.mrf.mxu1 }
  0xfb   : > { %4042 = vmatmul.mubr.msk.bf16.gmra.mxu0 %vm748_vm3, %v5019_v20 }
  0xfc   : > { %4045 = vmatprep.mubr.msk.bf16.mxu0 %vm748_vm3, %v5025_v48 }
  0xfe   : > { %4008 = vmatmul.mubr.msk.bf16.gmra.mxu1 %vm748_vm3, %v4917_v1 }
  0xff   : > { %4011 = vmatprep.mubr.msk.bf16.mxu1 %vm748_vm3, %v5003_v23 }
 0x100   : > { %v5231_v20 = vpop.f32.mrf.mxu0 }
 0x102   : > { %v5241_v55 = vpop.f32.mrf.mxu0 }
 0x103   : > { %4046 = vmatmul.mubr.msk.bf16.gmra.mxu0 %vm748_vm3, %v5047_v39 }
 0x104   : > { %4049 = vmatprep.mubr.msk.bf16.mxu0 %vm748_vm3, %v5053_v22  ;;  %v5237_v48 = vpop.f32.mrf.mxu1  ;;  %v5247_v39 = vpop.f32.mrf.mxu0 }
 0x106   : > { %4012 = vmatmul.mubr.msk.bf16.gmra.mxu1 %vm748_vm3, %v5008_v8  ;;  %v5243_v45 = vpop.f32.mrf.mxu1  ;;  %v5257_v44 = vpop.f32.mrf.mxu0 }
 0x107   : > { %4015 = vmatprep.mubr.msk.bf16.mxu1 %vm748_vm3, %v5041_v13 }
 0x108   : > { %v5253_v22 = vpop.f32.mrf.mxu1 }
 0x10a   : > { %v5259_v49 = vpop.f32.mrf.mxu1 }
 0x10b   : > { %4050 = vmatmul.mubr.msk.bf16.gmra.mxu0 %vm748_vm3, %v4922_v18 }
 0x10c   : > { %4053 = vmatprep.mubr.msk.bf16.mxu0 %vm748_vm3, %v4935_v6 }
 0x10e   : > { %4016 = vmatmul.mubr.msk.bf16.gmra.mxu1 %vm748_vm3, %v5043_v16 }
 0x10f   : > { %4019 = vmatprep.mubr.msk.bf16.mxu1 %vm748_vm3, %v4958_v21 }
 0x111   : > { %v5263_v18 = vpop.f32.mrf.mxu0 }
 0x113   : > { %4054 = vmatmul.mubr.msk.bf16.gmra.mxu0 %vm748_vm3, %v4949_v43  ;;  %v5273_v29 = vpop.f32.mrf.mxu0 }
 0x114   : > { %4057 = vmatprep.mubr.msk.bf16.mxu0 %vm748_vm3, %v4964_v28  ;;  %v5283_v28 = vld [vmem:[%s4401_s13 + $0xcc] sm:$0xf] }
 0x115   : > { %v5279_v43 = vpop.f32.mrf.mxu0 }
 0x116   : > { %4020 = vmatmul.mubr.msk.bf16.gmra.mxu1 %vm748_vm3, %v4973_v50  ;;  %v5269_v6 = vpop.f32.mrf.mxu1 }
 0x117   : > { %6108 = vst [vmem:[#allocation23_spill] sm:$0xff] %v5269_v6  ;;  %4023 = vmatprep.mubr.msk.bf16.mxu1 %vm748_vm3, %v4995_v52  ;;  %v5292_v31 = vpop.f32.mrf.mxu0 }
 0x118   : > { %v5275_v24 = vpop.f32.mrf.mxu1 }
 0x119   : > { %6109 = vst [vmem:[#allocation21_spill] sm:$0xff] %v5275_v24 }
 0x11a   : > { %v5290_v38 = vpop.f32.mrf.mxu1 }
 0x11b   : > { %4058 = vmatmul.mubr.msk.bf16.gmra.mxu0 %vm748_vm3, %v4979_v9  ;;  %6110 = vst [vmem:[#allocation24_spill] sm:$0xff] %v5290_v38  ;;  %v3548_v9 = vcombine.low %v5283_v28, %v5286_v61 }
 0x11c   : > { %4061 = vmatprep.mubr.msk.bf16.mxu0 %vm748_vm3, %v3493_v3  ;;  %v5298_v27 = vpop.f32.mrf.mxu1 }
 0x11d   : > { %6111 = vst [vmem:[#allocation26_spill] sm:$0xff] %v5298_v27 }
 0x11e   : > { %4024 = vmatmul.mubr.msk.bf16.gmra.mxu1 %vm748_vm3, %v5006_v58 }
 0x11f   : > { %4027 = vmatprep.mubr.msk.bf16.mxu1 %vm748_vm3, %v5015_v2 }
 0x123   : > { %v5300_v25 = vpop.f32.mrf.mxu0  ;;  %4062 = vmatmul.mubr.msk.bf16.gmra.mxu0 %vm748_vm3, %v3548_v9 }
 0x124   : > { %4101 = vmatprep.mubr.msk.bf16.mxu0 %vm748_vm3, %v4838_v37 }
 0x125   : > { %v5305_v41 = vpop.f32.mrf.mxu0 }
 0x126   : > { %v5307_v3 = vpop.f32.mrf.mxu1  ;;  %4028 = vmatmul.mubr.msk.bf16.gmra.mxu1 %vm748_vm3, %v5094_v11 }
 0x127   : > { %6112 = vst [vmem:[#allocation11_spill] sm:$0xff] %v5307_v3  ;;  %v5311_v51 = vpop.f32.mrf.mxu0  ;;  %4067 = vmatprep.mubr.msk.bf16.mxu1 %vm748_vm3, %v6096_v34 }
 0x128   : > { %v5315_v62 = vpop.f32.mrf.mxu1 }
 0x129   : > { %6113 = vst [vmem:[#allocation6_spill] sm:$0xff] %v5315_v62  ;;  %v5317_v27 = vpop.f32.mrf.mxu0 }
 0x12a   : > { %v5319_v9 = vpop.f32.mrf.mxu1 }
 0x12b   : > { %6114 = vst [vmem:[#allocation7_spill] sm:$0xff] %v5319_v9  ;;  %v3899_v38 = vpop.f32.mrf.mxu0  ;;  %4102 = vmatmul.mubr.msk.bf16.vlgmr.msra.gmra.mxu0 %vm748_vm3, %v4878_v14 }
 0x12c   : > { %v5323_v37 = vpop.f32.mrf.mxu1  ;;  %4105 = vmatprep.mubr.msk.bf16.mxu0 %vm748_vm3, %v4880_v10 }
 0x12d   : > { %6115 = vst [vmem:[#allocation9_spill] sm:$0xff] %v5323_v37  ;;  %v1520_v3 = vpop.f32.mrf.mxu0 }
 0x12e   : > { %v3865_v24 = vpop.f32.mrf.mxu1  ;;  %4068 = vmatmul.mubr.msk.bf16.vlgmr.msra.gmra.mxu1 %vm748_vm3, %v6097_v42 }
 0x12f   : > { %v1136_v34 = vadd.f32 %v3865_v24, %v5199_v63  ;;  %v3900_v62 = vpop.f32.mrf.mxu0  ;;  %4071 = vmatprep.mubr.msk.bf16.mxu1 %vm748_vm3, %v6098_v46 }
 0x130   : > { %v1127_v9 = vpop.f32.mrf.mxu1 }
 0x131   : > { %v5332_v54 = vadd.f32 %v3899_v38, %v1136_v34  ;;  %v1128_v14 = vadd.f32 %v1127_v9, %v5209_v53  ;;  %v1523_v37 = vpop.f32.mrf.mxu0 }
 0x132   : > { %v3866_v6 = vpop.f32.mrf.mxu1 }
 0x133   : > { %v5335_v32 = vadd.f32 %v1520_v3, %v1128_v14  ;;  %v1139_v10 = vadd.f32 %v3866_v6, %v5215_v56  ;;  %v3903_v12 = vpop.f32.mrf.mxu0  ;;  %4106 = vmatmul.mubr.msk.bf16.gmra.mxu0 %vm748_vm3, %v4915_v30 }
 0x134   : > { %v1130_v42 = vpop.f32.mrf.mxu1  ;;  %4109 = vmatprep.mubr.msk.bf16.mxu0 %vm748_vm3, %v4917_v1 }
 0x135   : > { %v5342_v46 = vadd.f32 %v3900_v62, %v1139_v10  ;;  %v1131_v63 = vadd.f32 %v1130_v42, %v5225_v59  ;;  %v1536_v24 = vpop.f32.mrf.mxu0 }
 0x136   : > { %v3869_v53 = vpop.f32.mrf.mxu1  ;;  %4072 = vmatmul.mubr.msk.bf16.gmra.mxu1 %vm748_vm3, %v6099_v19 }
 0x137   : > { %v5347_v38 = vadd.f32 %v1523_v37, %v1131_v63  ;;  %v1152_v56 = vadd.f32 %v3869_v53, %v5231_v20  ;;  %v3904_v6 = vpop.f32.mrf.mxu0  ;;  %4075 = vmatprep.mubr.msk.bf16.mxu1 %vm748_vm3, %v6100_v36 }
 0x138   : > { %v1143_v30 = vpop.f32.mrf.mxu1 }
 0x139   : > { %v5352_v3 = vadd.f32 %v3903_v12, %v1152_v56  ;;  %v1144_v1 = vadd.f32 %v1143_v30, %v5241_v55  ;;  %v1539_v62 = vpop.f32.mrf.mxu0 }
 0x13a   : > { %v3870_v59 = vpop.f32.mrf.mxu1 }
 0x13b   : > { %v5355_v9 = vadd.f32 %v1536_v24, %v1144_v1  ;;  %v1155_v34 = vadd.f32 %v3870_v59, %v5247_v39  ;;  %v3907_v19 = vpop.f32.mrf.mxu0  ;;  %4110 = vmatmul.mubr.msk.bf16.gmra.mxu0 %vm748_vm3, %v5003_v23 }
 0x13c   : > { %v1146_v20 = vpop.f32.mrf.mxu1  ;;  %4113 = vmatprep.mubr.msk.bf16.mxu0 %vm748_vm3, %v5008_v8 }
 0x13d   : > { %v5362_v36 = vadd.f32 %v3904_v6, %v1155_v34  ;;  %v1147_v12 = vadd.f32 %v1146_v20, %v5257_v44  ;;  %v1552_v37 = vpop.f32.mrf.mxu0 }
 0x13e   : > { %v3873_v55 = vpop.f32.mrf.mxu1  ;;  %4076 = vmatmul.mubr.msk.bf16.gmra.mxu1 %vm748_vm3, %v4790_v15 }
 0x13f   : > { %v5367_v14 = vadd.f32 %v1539_v62, %v1147_v12  ;;  %v1168_v39 = vadd.f32 %v3873_v55, %v5263_v18  ;;  %v3908_v10 = vpop.f32.mrf.mxu0  ;;  %4079 = vmatprep.mubr.msk.bf16.mxu1 %vm748_vm3, %v6101_v26 }
 0x140   : > { %v1159_v23 = vpop.f32.mrf.mxu1 }
 0x141   : > { %v5372_v42 = vadd.f32 %v3907_v19, %v1168_v39  ;;  %v1160_v8 = vadd.f32 %v1159_v23, %v5273_v29  ;;  %v1555_v63 = vpop.f32.mrf.mxu0 }
 0x142   : > { %v3874_v44 = vpop.f32.mrf.mxu1 }
 0x143   : > { %v5375_v24 = vadd.f32 %v1552_v37, %v1160_v8  ;;  %v1171_v53 = vadd.f32 %v3874_v44, %v5279_v43  ;;  %v3911_v15 = vpop.f32.mrf.mxu0  ;;  %4114 = vmatmul.mubr.msk.bf16.gmra.mxu0 %vm748_vm3, %v5041_v13  ;;  %v2535_v37 = vshll.u32 %v5283_v28, 16 }
 0x144   : > { %v1162_v18 = vpop.f32.mrf.mxu1  ;;  %4117 = vmatprep.mubr.msk.bf16.mxu0 %vm748_vm3, %v5043_v16 }
 0x145   : > { %v5382_v26 = vadd.f32 %v3908_v10, %v1171_v53  ;;  %v1163_v56 = vadd.f32 %v1162_v18, %v5292_v31  ;;  %v1568_v6 = vpop.f32.mrf.mxu0  ;;  %v2537_v44 = vrot.slane %v2535_v37, 5 }
 0x146   : > { %v3877_v29 = vpop.f32.mrf.mxu1  ;;  %4080 = vmatmul.mubr.msk.bf16.gmra.mxu1 %vm748_vm3, %v6102_v0 }
 0x147   : > { %v5387_v30 = vadd.f32 %v1555_v63, %v1163_v56  ;;  %v1184_v43 = vadd.f32 %v3877_v29, %v5300_v25  ;;  %v3912_v1 = vpop.f32.mrf.mxu0  ;;  %4083 = vmatprep.mubr.msk.bf16.mxu1 %vm748_vm3, %v6103_v35 }
 0x148   : > { %v1175_v13 = vpop.f32.mrf.mxu1 }
 0x149   : > { %v5392_v62 = vadd.f32 %v3911_v15, %v1184_v43  ;;  %v1176_v16 = vadd.f32 %v1175_v13, %v5305_v41  ;;  %v1571_v59 = vpop.f32.mrf.mxu0  ;;  %v2532_v41 = vshrl.u32 %v5283_v28, 16 }
 0x14a   : > { %v3878_v31 = vpop.f32.mrf.mxu1 }
 0x14b   : > { %v5395_v34 = vadd.f32 %v1568_v6, %v1176_v16  ;;  %v1187_v19 = vadd.f32 %v3878_v31, %v5311_v51  ;;  %v3915_v0 = vpop.f32.mrf.mxu0  ;;  %4118 = vmatmul.mubr.msk.bf16.gmra.mxu0 %vm748_vm3, %v4958_v21  ;;  %v2541_v51 = vshll.u32 %v5286_v61, 16  ;;  %v2545_v21 = vshrl.u32 %v5286_v61, 16 }
 0x14c   : > { %v1178_v25 = vpop.f32.mrf.mxu1  ;;  %4121 = vmatprep.mubr.msk.bf16.mxu0 %vm748_vm3, %v4973_v50 }
 0x14d   : > { %v5402_v35 = vadd.f32 %v3912_v1, %v1187_v19  ;;  %v1179_v20 = vadd.f32 %v1178_v25, %v5317_v27  ;;  %v1584_v12 = vpop.f32.mrf.mxu0  ;;  %v2543_v15 = vrot.slane %v2541_v51, 5  ;;  %v2547_v18 = vrot.slane %v2545_v21, 4 }
 0x14e   : > { %v3881_v55 = vpop.f32.mrf.mxu1  ;;  %4084 = vmatmul.mubr.msk.bf16.gmra.mxu1 %vm748_vm3, %v6104_v40  ;;  %v2534_v40 = vrot.slane %v2532_v41, 4  ;;  %v3583_v19 = vrot.slane %v5283_v28, 9 }
 0x14f   : > { %v5411_v39 = vadd.f32 %v1571_v59, %v1179_v20  ;;  %v1200_v50 = vadd.f32 %v3881_v55, %v5205_v47  ;;  %v3916_v10 = vpop.f32.mrf.mxu0  ;;  %4087 = vmatprep.mubr.msk.bf16.mxu1 %vm748_vm3, %v6105_v57  ;;  %v2762_v57 = vrot.slane %v5286_v61, 5 }
 0x150   : > { %v1191_v27 = vpop.f32.mrf.mxu1 }
 0x151   : > { %v5416_v23 = vadd.f32 %v3915_v0, %v1200_v50  ;;  %v1192_v8 = vadd.f32 %v1191_v27, %v5211_v33  ;;  %v1587_v63 = vpop.f32.mrf.mxu0  ;;  %v309_v33 = vld [vmem:[%s4401_s13 + $0xd4] sm:$0x1] }
 0x152   : > { %v3882_v53 = vpop.f32.mrf.mxu1  ;;  %v2551_v31 = vshll.u32 %v309_v33, 16  ;;  %v2765_v25 = vrot.slane %v309_v33, 5 }
 0x153   : > { %v5419_v56 = vadd.f32 %v1584_v12, %v1192_v8  ;;  %v1203_v47 = vadd.f32 %v3882_v53, %v5221_v17  ;;  %v3919_v6 = vpop.f32.mrf.mxu0  ;;  %4122 = vmatmul.mubr.msk.bf16.gmra.mxu0 %vm748_vm3, %v4995_v52  ;;  %v2538_v17 = vor.u32 %v2537_v44, %v2534_v40 }
 0x154   : > { %v1194_v29 = vpop.f32.mrf.mxu1  ;;  %4125 = vmatprep.mubr.msk.bf16.mxu0 %vm748_vm3, %v5006_v58  ;;  %v2548_v58 = vor.u32 %v2547_v18, %v2543_v15  ;;  %v2553_v28 = vrot.slane %v2551_v31, 5 }
 0x155   : > { %v5428_v43 = vadd.f32 %v3916_v10, %v1203_v47  ;;  %v1195_v1 = vadd.f32 %v1194_v29, %v5227_v4  ;;  %v1600_v13 = vpop.f32.mrf.mxu0  ;;  %v2764_v4 = vrot.slane %v2762_v57, 4  ;;  %v2539_v37 = vrot.slane %v2538_v17, 4  ;;  %v6119_v47 = vld [vmem:[#allocation19_spill] sm:$0xff]  ;;  %v6120_v29 = vld [vmem:[#allocation21_spill] sm:$0xff]  ;;  %v6121_v17 = vld [vmem:[#allocation24_spill] sm:$0xff] }
 0x156   : > { %v3885_v16 = vpop.f32.mrf.mxu1  ;;  %4088 = vmatmul.mubr.msk.bf16.gmra.mxu1 %vm748_vm3, %v6106_v7 }
 0x157   : > { %v5433_v59 = vadd.f32 %v1587_v63, %v1195_v1  ;;  %v1216_v52 = vadd.f32 %v3885_v16, %v5237_v48  ;;  %v3920_v61 = vpop.f32.mrf.mxu0  ;;  %4091 = vmatprep.mubr.msk.bf16.mxu1 %vm748_vm3, %v4764_v5  ;;  %v2549_v5 = vrot.slane %v2548_v58, 4  ;;  %v2766_v50 = vsel %vm4769_vm7, %v2764_v4, %v2765_v25  ;;  %v6116_v63 = vld [vmem:[#allocation28_spill] sm:$0xff] }
 0x158   : > { %v1207_v0 = vpop.f32.mrf.mxu1  ;;  %v2544_v40 = vsel %vm4446_vm4, %v2539_v37, %v2543_v15 }
 0x159   : > { %v5439_v20 = vadd.f32 %v3919_v6, %v1216_v52  ;;  %v1208_v7 = vadd.f32 %v1207_v0, %v5243_v45  ;;  %v1603_v12 = vpop.f32.mrf.mxu0  ;;  %v2763_v45 = vsel %vm4769_vm7, %v3583_v19, %v2762_v57  ;;  %v2554_v60 = vsel %vm4446_vm4, %v2549_v5, %v2553_v28  ;;  %v6122_v19 = vld [vmem:[#allocation26_spill] sm:$0xff] }
 0x15a   : > { %v3886_v41 = vpop.f32.mrf.mxu1  ;;  %v3566_v15 = vcombine.low %v2544_v40, %v2554_v60  ;;  %v6124_v5 = vld [vmem:[#allocation6_spill] sm:$0xff]  ;;  %v6126_v40 = vld [vmem:[#allocation9_spill] sm:$0xff] }
 0x15b   : > { %v5442_v55 = vadd.f32 %v1600_v13, %v1208_v7  ;;  %v1219_v48 = vadd.f32 %v3886_v41, %v5253_v22  ;;  %v3923_v51 = vpop.f32.mrf.mxu0  ;;  %4126 = vmatmul.mubr.msk.bf16.gmra.mxu0 %vm748_vm3, %v5015_v2 }
 0x15c   : > { %v1210_v21 = vpop.f32.mrf.mxu1  ;;  %4129 = vmatprep.mubr.msk.bf16.mxu0 %vm748_vm3, %v5094_v11  ;;  %v6118_v11 = vld [vmem:[#allocation23_spill] sm:$0xff] }
 0x15d   : > { %v5453_v10 = vadd.f32 %v3920_v61, %v1219_v48  ;;  %v1211_v22 = vadd.f32 %v1210_v21, %v5259_v49  ;;  %v1616_v27 = vpop.f32.mrf.mxu0  ;;  %v3585_v49 = vcombine.low %v2763_v45, %v2766_v50 }
 0x15e   : > { %v3889_v8 = vpop.f32.mrf.mxu1  ;;  %4092 = vmatmul.mubr.msk.bf16.gmra.mxu1 %vm748_vm3, %v6116_v63 }
 0x15f   : > { %v5460_v44 = vadd.f32 %v1603_v12, %v1211_v22  ;;  %v1232_v53 = vadd.f32 %v3889_v8, %v6118_v11  ;;  %v3924_v18 = vpop.f32.mrf.mxu0  ;;  %4095 = vmatprep.mubr.msk.bf16.mxu1 %vm748_vm3, %v6119_v47  ;;  %v6123_v12 = vld [vmem:[#allocation11_spill] sm:$0xff] }
 0x160   : > { %v1223_v6 = vpop.f32.mrf.mxu1  ;;  %v6125_v22 = vld [vmem:[#allocation7_spill] sm:$0xff] }
 0x161   : > { %v5467_v57 = vadd.f32 %v3923_v51, %v1232_v53  ;;  %v1224_v33 = vadd.f32 %v1223_v6, %v6120_v29  ;;  %v1619_v1 = vpop.f32.mrf.mxu0 }
 0x162   : > { %v3890_v13 = vpop.f32.mrf.mxu1 }
 0x163   : > { %v5470_v16 = vadd.f32 %v1616_v27, %v1224_v33  ;;  %v1235_v52 = vadd.f32 %v3890_v13, %v6121_v17  ;;  %v3927_v61 = vpop.f32.mrf.mxu0  ;;  %4130 = vmatmul.mubr.msk.bf16.gmra.mxu0 %vm748_vm3, %v3585_v49 }
 0x164   : > { %v1226_v58 = vpop.f32.mrf.mxu1 }
 0x165   : > { %v5474_v31 = vadd.f32 %v3924_v18, %v1235_v52  ;;  %v1227_v0 = vadd.f32 %v1226_v58, %v6122_v19  ;;  %v1632_v4 = vpop.f32.mrf.mxu0 }
 0x166   : > { %v3893_v25 = vpop.f32.mrf.mxu1  ;;  %4096 = vmatmul.mubr.msk.bf16.gmra.mxu1 %vm748_vm3, %v3566_v15 }
 0x167   : > { %v5478_v7 = vadd.f32 %v1619_v1, %v1227_v0  ;;  %v1248_v41 = vadd.f32 %v3893_v25, %v6123_v12  ;;  %v3928_v37 = vpop.f32.mrf.mxu0 }
 0x168   : > { %v1239_v48 = vpop.f32.mrf.mxu1 }
 0x169   : > { %v5481_v51 = vadd.f32 %v3927_v61, %v1248_v41  ;;  %v1240_v28 = vadd.f32 %v1239_v48, %v6124_v5  ;;  %v1635_v21 = vpop.f32.mrf.mxu0 }
 0x16a   : > { %v3894_v45 = vpop.f32.mrf.mxu1 }
 0x16b   : > { %v5484_v50 = vadd.f32 %v1632_v4, %v1240_v28  ;;  %v1251_v27 = vadd.f32 %v3894_v45, %v6125_v22  ;;  %v3967_v8 = vpop.f32.mrf.mxu0 }
 0x16c   : > { %v1242_v63 = vpop.f32.mrf.mxu1 }
 0x16d   : > { %v5487_v2 = vadd.f32 %v3928_v37, %v1251_v27  ;;  %v1243_v11 = vadd.f32 %v1242_v63, %v6126_v40  ;;  %v1954_v53 = vpop.f32.mrf.mxu0 }
 0x16e   : > { %v3933_v18 = vpop.f32.mrf.mxu1 }
 0x16f   : > { %v5490_v47 = vadd.f32 %v1635_v21, %v1243_v11  ;;  %v1855_v60 = vadd.f32 %v3933_v18, %v5332_v54  ;;  %v3968_v49 = vpop.f32.mrf.mxu0 }
 0x170   : > { %v1726_v6 = vpop.f32.mrf.mxu1 }
 0x171   : > { %v5493_v29 = vadd.f32 %v3967_v8, %v1855_v60  ;;  %v1853_v33 = vadd.f32 %v1726_v6, %v5335_v32  ;;  %v1957_v1 = vpop.f32.mrf.mxu0 }
 0x172   : > { %v3934_v13 = vpop.f32.mrf.mxu1 }
 0x173   : > { %v5496_v15 = vadd.f32 %v1954_v53, %v1853_v33  ;;  %v1856_v17 = vadd.f32 %v3934_v13, %v5342_v46  ;;  %v3971_v52 = vpop.f32.mrf.mxu0 }
 0x174   : > { %v1729_v61 = vpop.f32.mrf.mxu1 }
 0x175   : > { %v5499_v58 = vadd.f32 %v3968_v49, %v1856_v17  ;;  %v1854_v19 = vadd.f32 %v1729_v61, %v5347_v38  ;;  %v1970_v0 = vpop.f32.mrf.mxu0 }
 0x176   : > { %v3937_v54 = vpop.f32.mrf.mxu1 }
 0x177   : > { %v5502_v4 = vadd.f32 %v1957_v1, %v1854_v19  ;;  %v1859_v25 = vadd.f32 %v3937_v54, %v5352_v3  ;;  %v3972_v12 = vpop.f32.mrf.mxu0 }
 0x178   : > { %v1742_v32 = vpop.f32.mrf.mxu1 }
 0x179   : > { %v5505_v41 = vadd.f32 %v3971_v52, %v1859_v25  ;;  %v1857_v37 = vadd.f32 %v1742_v32, %v5355_v9  ;;  %v1973_v48 = vpop.f32.mrf.mxu0 }
 0x17a   : > { %v3938_v46 = vpop.f32.mrf.mxu1 }
 0x17b   : > { %v5508_v5 = vadd.f32 %v1970_v0, %v1857_v37  ;;  %v1860_v28 = vadd.f32 %v3938_v46, %v5362_v36  ;;  %v3975_v21 = vpop.f32.mrf.mxu0 }
 0x17c   : > { %v1745_v38 = vpop.f32.mrf.mxu1 }
 0x17d   : > { %v5511_v45 = vadd.f32 %v3972_v12, %v1860_v28  ;;  %v1858_v22 = vadd.f32 %v1745_v38, %v5367_v14  ;;  %v1986_v27 = vpop.f32.mrf.mxu0 }
 0x17e   : > { %v3941_v3 = vpop.f32.mrf.mxu1 }
 0x17f   : > { %v5514_v8 = vadd.f32 %v1973_v48, %v1858_v22  ;;  %v1863_v63 = vadd.f32 %v3941_v3, %v5372_v42  ;;  %v3976_v40 = vpop.f32.mrf.mxu0 }
 0x180   : > { %v1758_v9 = vpop.f32.mrf.mxu1 }
 0x181   : > { %v5517_v11 = vadd.f32 %v3975_v21, %v1863_v63  ;;  %v1861_v53 = vadd.f32 %v1758_v9, %v5375_v24  ;;  %v1989_v18 = vpop.f32.mrf.mxu0 }
 0x182   : > { %v3942_v36 = vpop.f32.mrf.mxu1 }
 0x183   : > { %v5520_v60 = vadd.f32 %v1986_v27, %v1861_v53  ;;  %v1864_v49 = vadd.f32 %v3942_v36, %v5382_v26  ;;  %v3979_v6 = vpop.f32.mrf.mxu0 }
 0x184   : > { %v1761_v14 = vpop.f32.mrf.mxu1 }
 0x185   : > { %v5523_v33 = vadd.f32 %v3976_v40, %v1864_v49  ;;  %v1862_v1 = vadd.f32 %v1761_v14, %v5387_v30  ;;  %v2002_v13 = vpop.f32.mrf.mxu0 }
 0x186   : > { %v3945_v42 = vpop.f32.mrf.mxu1 }
 0x187   : > { %v5526_v17 = vadd.f32 %v1989_v18, %v1862_v1  ;;  %v1867_v52 = vadd.f32 %v3945_v42, %v5392_v62  ;;  %v3980_v61 = vpop.f32.mrf.mxu0 }
 0x188   : > { %v1774_v24 = vpop.f32.mrf.mxu1 }
 0x189   : > { %v5529_v19 = vadd.f32 %v3979_v6, %v1867_v52  ;;  %v1865_v0 = vadd.f32 %v1774_v24, %v5395_v34  ;;  %v2005_v54 = vpop.f32.mrf.mxu0 }
 0x18a   : > { %v3946_v26 = vpop.f32.mrf.mxu1 }
 0x18b   : > { %v5532_v25 = vadd.f32 %v2002_v13, %v1865_v0  ;;  %v1868_v12 = vadd.f32 %v3946_v26, %v5402_v35  ;;  %v3983_v32 = vpop.f32.mrf.mxu0 }
 0x18c   : > { %v1777_v30 = vpop.f32.mrf.mxu1 }
 0x18d   : > { %v5535_v37 = vadd.f32 %v3980_v61, %v1868_v12  ;;  %v1866_v48 = vadd.f32 %v1777_v30, %v5411_v39  ;;  %v2018_v46 = vpop.f32.mrf.mxu0 }
 0x18e   : > { %v3949_v62 = vpop.f32.mrf.mxu1 }
 0x18f   : > { %v5538_v28 = vadd.f32 %v2005_v54, %v1866_v48  ;;  %v1871_v21 = vadd.f32 %v3949_v62, %v5416_v23  ;;  %v3984_v38 = vpop.f32.mrf.mxu0 }
 0x190   : > { %v1790_v34 = vpop.f32.mrf.mxu1 }
 0x191   : > { %v5541_v22 = vadd.f32 %v3983_v32, %v1871_v21  ;;  %v1869_v27 = vadd.f32 %v1790_v34, %v5419_v56  ;;  %v2021_v3 = vpop.f32.mrf.mxu0 }
 0x192   : > { %v3950_v35 = vpop.f32.mrf.mxu1 }
 0x193   : > { %v5544_v63 = vadd.f32 %v2018_v46, %v1869_v27  ;;  %v1872_v40 = vadd.f32 %v3950_v35, %v5428_v43  ;;  %v3987_v9 = vpop.f32.mrf.mxu0 }
 0x194   : > { %v1793_v39 = vpop.f32.mrf.mxu1 }
 0x195   : > { %v5547_v53 = vadd.f32 %v3984_v38, %v1872_v40  ;;  %v1870_v18 = vadd.f32 %v1793_v39, %v5433_v59  ;;  %v2034_v36 = vpop.f32.mrf.mxu0 }
 0x196   : > { %v3953_v23 = vpop.f32.mrf.mxu1 }
 0x197   : > { %6127 = vst [vmem:[#allocation12_spill] sm:$0xff] %v5547_v53  ;;  %v5550_v49 = vadd.f32 %v2021_v3, %v1870_v18  ;;  %v1875_v6 = vadd.f32 %v3953_v23, %v5439_v20  ;;  %v3988_v14 = vpop.f32.mrf.mxu0 }
 0x198   : > { %v1806_v56 = vpop.f32.mrf.mxu1 }
 0x199   : > { %6128 = vst [vmem:[#allocation10_spill] sm:$0xff] %v5550_v49  ;;  %v5553_v1 = vadd.f32 %v3987_v9, %v1875_v6  ;;  %v1873_v13 = vadd.f32 %v1806_v56, %v5442_v55  ;;  %v2037_v42 = vpop.f32.mrf.mxu0 }
 0x19a   : > { %v3954_v43 = vpop.f32.mrf.mxu1 }
 0x19b   : > { %6129 = vst [vmem:[#allocation14_spill] sm:$0xff] %v5553_v1  ;;  %v5556_v52 = vadd.f32 %v2034_v36, %v1873_v13  ;;  %v1876_v61 = vadd.f32 %v3954_v43, %v5453_v10  ;;  %v3991_v24 = vpop.f32.mrf.mxu0 }
 0x19c   : > { %v1809_v59 = vpop.f32.mrf.mxu1 }
 0x19d   : > { %6130 = vst [vmem:[#allocation16_spill] sm:$0xff] %v5556_v52  ;;  %v5559_v0 = vadd.f32 %v3988_v14, %v1876_v61  ;;  %v1874_v54 = vadd.f32 %v1809_v59, %v5460_v44  ;;  %v2050_v26 = vpop.f32.mrf.mxu0 }
 0x19e   : > { %v3957_v20 = vpop.f32.mrf.mxu1 }
 0x19f   : > { %6131 = vst [vmem:[#allocation18_spill] sm:$0xff] %v5559_v0  ;;  %v5562_v12 = vadd.f32 %v2037_v42, %v1874_v54  ;;  %v1879_v32 = vadd.f32 %v3957_v20, %v5467_v57  ;;  %v3992_v30 = vpop.f32.mrf.mxu0 }
 0x1a0   : > { %v1822_v55 = vpop.f32.mrf.mxu1 }
 0x1a1   : > { %6132 = vst [vmem:[#allocation22_spill] sm:$0xff] %v5562_v12  ;;  %v5565_v48 = vadd.f32 %v3991_v24, %v1879_v32  ;;  %v1877_v46 = vadd.f32 %v1822_v55, %v5470_v16  ;;  %v2053_v62 = vpop.f32.mrf.mxu0 }
 0x1a2   : > { %v3958_v10 = vpop.f32.mrf.mxu1 }
 0x1a3   : > { %6133 = vst [vmem:[#allocation27_spill] sm:$0xff] %v5565_v48  ;;  %v5568_v21 = vadd.f32 %v2050_v26, %v1877_v46  ;;  %v1880_v38 = vadd.f32 %v3958_v10, %v5474_v31  ;;  %v3995_v34 = vpop.f32.mrf.mxu0 }
 0x1a4   : > { %v1825_v44 = vpop.f32.mrf.mxu1 }
 0x1a5   : > { %6134 = vst [vmem:[#allocation8_spill] sm:$0xff] %v5568_v21  ;;  %v5571_v27 = vadd.f32 %v3992_v30, %v1880_v38  ;;  %v1878_v3 = vadd.f32 %v1825_v44, %v5478_v7  ;;  %v2066_v35 = vpop.f32.mrf.mxu0 }
 0x1a6   : > { %v3961_v57 = vpop.f32.mrf.mxu1 }
 0x1a7   : > { %6135 = vst [vmem:[#allocation13_spill] sm:$0xff] %v5571_v27  ;;  %v5574_v40 = vadd.f32 %v2053_v62, %v1878_v3  ;;  %v1883_v9 = vadd.f32 %v3961_v57, %v5481_v51  ;;  %v3996_v39 = vpop.f32.mrf.mxu0 }
 0x1a8   : > { %v1838_v16 = vpop.f32.mrf.mxu1 }
 0x1a9   : > { %6136 = vst [vmem:[#allocation15_spill] sm:$0xff] %v5574_v40  ;;  %v5577_v18 = vadd.f32 %v3995_v34, %v1883_v9  ;;  %v1881_v36 = vadd.f32 %v1838_v16, %v5484_v50  ;;  %v2069_v23 = vpop.f32.mrf.mxu0 }
 0x1aa   : > { %v3962_v31 = vpop.f32.mrf.mxu1 }
 0x1ab   : > { %6137 = vst [vmem:[#allocation17_spill] sm:$0xff] %v5577_v18  ;;  %v5580_v6 = vadd.f32 %v2066_v35, %v1881_v36  ;;  %v1884_v14 = vadd.f32 %v3962_v31, %v5487_v2  ;;  %v5583_v56 = vpop.f32.mrf.mxu0 }
 0x1ac   : > { %v1841_v7 = vpop.f32.mrf.mxu1 }
 0x1ad   : > { %6138 = vst [vmem:[#allocation20_spill] sm:$0xff] %v5580_v6  ;;  %v5585_v13 = vadd.f32 %v3996_v39, %v1884_v14  ;;  %v1882_v42 = vadd.f32 %v1841_v7, %v5490_v47  ;;  %v5588_v51 = vpop.f32.mrf.mxu0 }
 0x1ae   : > { %v4001_v43 = vpop.f32.mrf.mxu1 }
 0x1af   : > { %6139 = vst [vmem:[#allocation25_spill] sm:$0xff] %v5585_v13  ;;  %v5590_v61 = vadd.f32 %v2069_v23, %v1882_v42  ;;  %v5592_v24 = vpop.f32.mrf.mxu0 }
 0x1b0   : > { %v2166_v50 = vpop.f32.mrf.mxu1 }
 0x1b1   : > { %6140 = vst [vmem:[#allocation28_spill] sm:$0xff] %v5590_v61  ;;  %v5594_v59 = vpop.f32.mrf.mxu0 }
 0x1b2   : > { %v4002_v54 = vpop.f32.mrf.mxu1 }
 0x1b3   : > { %v5596_v26 = vpop.f32.mrf.mxu0 }
 0x1b4   : > { %v5598_v2 = vpop.f32.mrf.mxu1 }
 0x1b5   : > { %v5600_v20 = vpop.f32.mrf.mxu0 }
 0x1b6   : > { %v5602_v32 = vpop.f32.mrf.mxu1 }
 0x1b7   : > { %v5604_v47 = vpop.f32.mrf.mxu0 }
 0x1b8   : > { %v5606_v30 = vpop.f32.mrf.mxu1 }
 0x1b9   : > { %v5608_v55 = vpop.f32.mrf.mxu0 }
 0x1ba   : > { %v5610_v46 = vpop.f32.mrf.mxu1 }
 0x1bb   : > { %v5612_v62 = vpop.f32.mrf.mxu0 }
 0x1bc   : > { %v5614_v10 = vpop.f32.mrf.mxu1 }
 0x1bd   : > { %v5616_v38 = vpop.f32.mrf.mxu0 }
 0x1be   : > { %v5618_v34 = vpop.f32.mrf.mxu1 }
 0x1bf   : > { %v5620_v44 = vpop.f32.mrf.mxu0 }
 0x1c0   : > { %v5622_v3 = vpop.f32.mrf.mxu1 }
 0x1c1   : > { %v5624_v35 = vpop.f32.mrf.mxu0 }
 0x1c2   : > { %v5626_v57 = vpop.f32.mrf.mxu1 }
 0x1c3   : > { %v5628_v9 = vpop.f32.mrf.mxu0 }
 0x1c4   : > { %v5630_v39 = vpop.f32.mrf.mxu1 }
 0x1c5   : > { %v5632_v16 = vpop.f32.mrf.mxu0 }
 0x1c6   : > { %v5634_v36 = vpop.f32.mrf.mxu1 }
 0x1c7   : > { %v5636_v23 = vpop.f32.mrf.mxu0 }
 0x1c8   : > { %v5638_v31 = vpop.f32.mrf.mxu1 }
 0x1c9   : > { %v5640_v14 = vpop.f32.mrf.mxu0 }
 0x1ca   : > { %v5642_v7 = vpop.f32.mrf.mxu1 }
 0x1cb   : > { %v5644_v42 = vpop.f32.mrf.mxu0 }
 0x1cc   : > { %v5646_v61 = vpop.f32.mrf.mxu1 }
 0x1cd   : > { %v5648_v13 = vpop.f32.mrf.mxu0 }
 0x1ce   : > { %6141 = vst [vmem:[#allocation5_spill] sm:$0xff] %v5648_v13  ;;  %v5650_v6 = vpop.f32.mrf.mxu1 }
 0x1cf   : > { %v5652_v18 = vpop.f32.mrf.mxu0 }
 0x1d0   : > { %6142 = vst [vmem:[#allocation23_spill] sm:$0xff] %v5652_v18  ;;  %v5654_v40 = vpop.f32.mrf.mxu1 }
 0x1d1   : > { %v5656_v27 = vpop.f32.mrf.mxu0 }
 0x1d2   : > { %6143 = vst [vmem:[#allocation19_spill] sm:$0xff] %v5656_v27  ;;  %v5658_v21 = vpop.f32.mrf.mxu1 }
 0x1d3   : > { %6144 = vst [vmem:[#allocation21_spill] sm:$0xff] %v5658_v21  ;;  %v5660_v48 = vpop.f32.mrf.mxu0 }
 0x1d4   : > { %6145 = vst [vmem:[#allocation24_spill] sm:$0xff] %v5660_v48  ;;  %v5662_v12 = vpop.f32.mrf.mxu1 }
 0x1d5   : > { %6146 = vst [vmem:[#allocation26_spill] sm:$0xff] %v5662_v12  ;;  %v5664_v0 = vpop.f32.mrf.mxu0 }
 0x1d6   : > { %6147 = vst [vmem:[#allocation11_spill] sm:$0xff] %v5664_v0  ;;  %v5666_v52 = vpop.f32.mrf.mxu1 }
 0x1d7   : > { %6148 = vst [vmem:[#allocation6_spill] sm:$0xff] %v5666_v52  ;;  %v5668_v1 = vpop.f32.mrf.mxu0 }
 0x1d8   : > { %6149 = vst [vmem:[#allocation7_spill] sm:$0xff] %v5668_v1  ;;  %v5670_v49 = vpop.f32.mrf.mxu1 }
 0x1d9   : > { %6150 = vst [vmem:[#allocation9_spill] sm:$0xff] %v5670_v49  ;;  %v5672_v13 = vpop.f32.mrf.mxu0 }
 0x1da   : > { %6151 = vst [vmem:[#allocation29_spill] sm:$0xff] %v5672_v13  ;;  %v5674_v18 = vpop.f32.mrf.mxu1 }
 0x1db   : > { %6152 = vst [vmem:[#allocation30_spill] sm:$0xff] %v5674_v18  ;;  %v5676_v53 = vpop.f32.mrf.mxu0 }
 0x1dc   : > { %6153 = vst [vmem:[#allocation31_spill] sm:$0xff] %v5676_v53  ;;  %v5678_v27 = vpop.f32.mrf.mxu1 }
 0x1dd   : > { %6154 = vst [vmem:[#allocation32_spill] sm:$0xff] %v5678_v27  ;;  %v5680_v21 = vpop.f32.mrf.mxu0 }
 0x1de   : > { %6155 = vst [vmem:[#allocation33_spill] sm:$0xff] %v5680_v21  ;;  %v5682_v48 = vpop.f32.mrf.mxu1 }
 0x1df   : > { %6156 = vst [vmem:[#allocation34_spill] sm:$0xff] %v5682_v48  ;;  %v5684_v12 = vpop.f32.mrf.mxu0 }
 0x1e0   : > { %6157 = vst [vmem:[#allocation35_spill] sm:$0xff] %v5684_v12  ;;  %v5686_v0 = vpop.f32.mrf.mxu1  ;;  %v2295_v12 = vadd.f32 %v4001_v43, %v5493_v29  ;;  %v2294_v29 = vadd.f32 %v5598_v2, %v5502_v4  ;;  %v5729_v4 = vld [vmem:[%s6005_s3] ss:$0 sm:$0xff] }
 0x1e1   : > { %6158 = vst [vmem:[#allocation36_spill] sm:$0xff] %v5686_v0  ;;  %v5688_v52 = vpop.f32.mrf.mxu0 }
 0x1e2   : > { %6159 = vst [vmem:[#allocation37_spill] sm:$0xff] %v5688_v52  ;;  %v5690_v1 = vpop.f32.mrf.mxu1  ;;  %v2293_v52 = vadd.f32 %v2166_v50, %v5496_v15  ;;  %v5720_v15 = vld [vmem:[%s6004_s2] ss:$0 sm:$0xff] }
 0x1e3   : > { %6160 = vst [vmem:[#allocation38_spill] sm:$0xff] %v5690_v1  ;;  %v5692_v49 = vpop.f32.mrf.mxu0 }
 0x1e4   : > { %6161 = vst [vmem:[#allocation39_spill] sm:$0xff] %v5692_v49  ;;  %v5694_v13 = vpop.f32.mrf.mxu1 }
 0x1e5   : > { %6162 = vst [vmem:[#allocation40_spill] sm:$0xff] %v5694_v13  ;;  %v5696_v18 = vpop.f32.mrf.mxu0 }
 0x1e6   : > { %6163 = vst [vmem:[#allocation41_spill] sm:$0xff] %v5696_v18  ;;  %v5698_v53 = vpop.f32.mrf.mxu1  ;;  %v2501_v18 = vadd.f32 %v5583_v56, %v2295_v12 }
 0x1e7   : > { %6164 = vst [vmem:[#allocation42_spill] sm:$0xff] %v5698_v53  ;;  %v5700_v27 = vpop.f32.mrf.mxu0  ;;  %v2296_v53 = vadd.f32 %v4002_v54, %v5499_v58 }
 0x1e8   : > { %6165 = vst [vmem:[#allocation43_spill] sm:$0xff] %v5700_v27  ;;  %v5702_v21 = vpop.f32.mrf.mxu1 }
 0x1e9   : > { %6166 = vst [vmem:[#allocation44_spill] sm:$0xff] %v5702_v21  ;;  %v5705_v48 = vpop.f32.mrf.mxu0  ;;  %v2499_v21 = vadd.f32 %v5588_v51, %v2293_v52  ;;  %v2299_v52 = vadd.f32 %v5602_v32, %v5505_v41  ;;  %v2300_v41 = vadd.f32 %v5610_v46, %v5511_v45 }
 0x1ea   : > { %6167 = vst [vmem:[#allocation45_spill] sm:$0xff] %v5705_v48  ;;  %v5707_v0 = vpop.f32.mrf.mxu1 }
 0x1eb   : > { %v4103_v1 = vpop.f32.mrf.mxu0 }
 0x1ec   : > { %v5710_v49 = vpop.f32.mrf.mxu1 }
 0x1ed   : > { %6168 = vst [vmem:[#allocation46_spill] sm:$0xff] %v5710_v49  ;;  %v2812_v13 = vpop.f32.mrf.mxu0  ;;  %v2502_v49 = vadd.f32 %v5592_v24, %v2296_v53 }
 0x1ee   : > { %v4069_v27 = vpop.f32.mrf.mxu1 }
 0x1ef   : > { %v2729_v43 = vadd.f32 %v4069_v27, %v2501_v18  ;;  %v4104_v48 = vpop.f32.mrf.mxu0  ;;  %v2500_v18 = vadd.f32 %v5594_v59, %v2294_v29 }
 0x1f0   : > { %v2600_v50 = vpop.f32.mrf.mxu1 }
 0x1f1   : > { %v2941_v12 = vadd.f32 %v4103_v1, %v2729_v43  ;;  %v2727_v58 = vadd.f32 %v2600_v50, %v2499_v21  ;;  %v2815_v56 = vpop.f32.mrf.mxu0  ;;  %v2297_v1 = vadd.f32 %v5606_v30, %v5508_v5 }
 0x1f2   : > { %v4070_v27 = vpop.f32.mrf.mxu1 }
 0x1f3   : > { %v2980_v51 = vmul.f32 %v5720_v15, %v2941_v12  ;;  %v2939_v54 = vadd.f32 %v2812_v13, %v2727_v58  ;;  %v2730_v53 = vadd.f32 %v4070_v27, %v2502_v49  ;;  %v4107_v24 = vpop.f32.mrf.mxu0  ;;  %v2505_v13 = vadd.f32 %v5596_v26, %v2299_v52 }
 0x1f4   : > { %v2603_v21 = vpop.f32.mrf.mxu1  ;;  %v2298_v49 = vadd.f32 %v5614_v10, %v5514_v8  ;;  %v2503_v58 = vadd.f32 %v5600_v20, %v2297_v1  ;;  %v2303_v27 = vadd.f32 %v5618_v34, %v5517_v11 }
 0x1f5   : > { %v3019_v2 = vadd.f32 %v5729_v4, %v2980_v51  ;;  %v2978_v32 = vmul.f32 %v5720_v15, %v2939_v54  ;;  %v2942_v43 = vadd.f32 %v4104_v48, %v2730_v53  ;;  %v2728_v59 = vadd.f32 %v2603_v21, %v2500_v18  ;;  %v2828_v29 = vpop.f32.mrf.mxu0 }
 0x1f6   : > { %v4073_v5 = vpop.f32.mrf.mxu1  ;;  %v2506_v48 = vadd.f32 %v5604_v47, %v2300_v41  ;;  %v2504_v53 = vadd.f32 %v5608_v55, %v2298_v49  ;;  %v2509_v55 = vadd.f32 %v5612_v62, %v2303_v27  ;;  %v2302_v62 = vadd.f32 %v5630_v39, %v5526_v17 }
 0x1f7   : > { %v3051_v30 = vmax.f32 %v3019_v2, 0.0  ;;  %v3017_v45 = vadd.f32 %v5729_v4, %v2978_v32  ;;  %v2981_v46 = vmul.f32 %v5720_v15, %v2942_v43  ;;  %v2940_v50 = vadd.f32 %v2815_v56, %v2728_v59  ;;  %v4108_v12 = vpop.f32.mrf.mxu0 }
 0x1f8   : > { %v2733_v26 = vadd.f32 %v4073_v5, %v2505_v13  ;;  %v2616_v52 = vpop.f32.mrf.mxu1  ;;  %v2301_v56 = vadd.f32 %v5622_v3, %v5520_v60  ;;  %v2304_v60 = vadd.f32 %v5626_v57, %v5523_v33 }
 0x1f9   : > { %v3643_v18 = vpack.c.bf16 %v3051_v30, %v3051_v30  ;;  %v3049_v8 = vmax.f32 %v3017_v45, 0.0  ;;  %v3020_v10 = vadd.f32 %v5729_v4, %v2981_v46  ;;  %v2979_v51 = vmul.f32 %v5720_v15, %v2940_v50  ;;  %v2831_v54 = vpop.f32.mrf.mxu0 }
 0x1fa   : > { %v2945_v20 = vadd.f32 %v4107_v24, %v2733_v26  ;;  %v2731_v1 = vadd.f32 %v2616_v52, %v2503_v58  ;;  %v4074_v47 = vpop.f32.mrf.mxu1  ;;  %v2507_v30 = vadd.f32 %v5616_v38, %v2301_v56  ;;  %v2307_v38 = vadd.f32 %v5634_v36, %v5529_v19 }
 0x1fb   : > { %3212 = vst.msk [vmem:[%s5755_s22 + $0x8] sm:$0xf] %vm3209_vm8, %v3643_v18  ;;  %v3641_v11 = vpack.c.bf16 %v3049_v8, %v3049_v8  ;;  %v3052_v34 = vmax.f32 %v3020_v10, 0.0  ;;  %v3018_v41 = vadd.f32 %v5729_v4, %v2979_v51  ;;  %v2734_v21 = vadd.f32 %v4074_v47, %v2506_v48  ;;  %v4111_v2 = vpop.f32.mrf.mxu0 }
 0x1fc   : > { %v2984_v3 = vmul.f32 %v5720_v15, %v2945_v20  ;;  %v2943_v24 = vadd.f32 %v2828_v29, %v2731_v1  ;;  %v2619_v32 = vpop.f32.mrf.mxu1  ;;  %v2510_v48 = vadd.f32 %v5620_v44, %v2304_v60  ;;  %v2508_v51 = vadd.f32 %v5624_v35, %v2302_v62 }
 0x1fd   : > { %3210 = vst.msk [vmem:[%s5755_s22] sm:$0xf] %vm3209_vm8, %v3641_v11  ;;  %v3644_v43 = vpack.c.bf16 %v3052_v34, %v3052_v34  ;;  %v3050_v59 = vmax.f32 %v3018_v41, 0.0  ;;  %v2946_v13 = vadd.f32 %v4108_v12, %v2734_v21  ;;  %v2732_v49 = vadd.f32 %v2619_v32, %v2504_v53  ;;  %v2844_v5 = vpop.f32.mrf.mxu0 }
 0x1fe   : > { %v3023_v45 = vadd.f32 %v5729_v4, %v2984_v3  ;;  %v2982_v33 = vmul.f32 %v5720_v15, %v2943_v24  ;;  %v4077_v57 = vpop.f32.mrf.mxu1  ;;  %v2305_v44 = vadd.f32 %v5638_v31, %v5532_v25  ;;  %v2513_v11 = vadd.f32 %v5628_v9, %v2307_v38 }
 0x1ff   : > { %3213 = vst.msk [vmem:[%s5755_s22 + $0xc] sm:$0xf] %vm3209_vm8, %v3644_v43  ;;  %v3642_v29 = vpack.c.bf16 %v3050_v59, %v3050_v59  ;;  %v2985_v46 = vmul.f32 %v5720_v15, %v2946_v13  ;;  %v2944_v50 = vadd.f32 %v2831_v54, %v2732_v49  ;;  %v2737_v12 = vadd.f32 %v4077_v57, %v2509_v55  ;;  %v4112_v58 = vpop.f32.mrf.mxu0 }
 0x200   : > { %v3055_v27 = vmax.f32 %v3023_v45, 0.0  ;;  %v3021_v17 = vadd.f32 %v5729_v4, %v2982_v33  ;;  %v2632_v39 = vpop.f32.mrf.mxu1  ;;  %v2308_v34 = vadd.f32 %v5642_v7, %v5535_v37  ;;  %v2511_v3 = vadd.f32 %v5632_v16, %v2305_v44 }
 0x201   : > { %3211 = vst.msk [vmem:[%s5755_s22 + $0x4] sm:$0xf] %vm3209_vm8, %v3642_v29  ;;  %v3024_v26 = vadd.f32 %v5729_v4, %v2985_v46  ;;  %v2983_v52 = vmul.f32 %v5720_v15, %v2944_v50  ;;  %v2949_v18 = vadd.f32 %v4111_v2, %v2737_v12  ;;  %v2735_v8 = vadd.f32 %v2632_v39, %v2507_v30  ;;  %v2847_v10 = vpop.f32.mrf.mxu0  ;;  %v6170_v39 = vld [vmem:[#allocation21_spill] sm:$0xff] }
 0x202   : > { %v3647_v19 = vpack.c.bf16 %v3055_v27, %v3055_v27  ;;  %v3053_v36 = vmax.f32 %v3021_v17, 0.0  ;;  %v4078_v54 = vpop.f32.mrf.mxu1  ;;  %v2306_v9 = vadd.f32 %v5646_v61, %v5538_v28  ;;  %v2311_v28 = vadd.f32 %v5650_v6, %v5541_v22 }
 0x203   : > { %v3056_v53 = vmax.f32 %v3024_v26, 0.0  ;;  %v3022_v56 = vadd.f32 %v5729_v4, %v2983_v52  ;;  %v2988_v20 = vmul.f32 %v5720_v15, %v2949_v18  ;;  %v2947_v1 = vadd.f32 %v2844_v5, %v2735_v8  ;;  %v4115_v47 = vpop.f32.mrf.mxu0 }
 0x204   : > { %3216 = vst.msk [vmem:[%s5755_s22 + $0x18] sm:$0xf] %vm3209_vm8, %v3647_v19  ;;  %v3645_v25 = vpack.c.bf16 %v3053_v36, %v3053_v36  ;;  %v2738_v35 = vadd.f32 %v4078_v54, %v2510_v48  ;;  %v2635_v31 = vpop.f32.mrf.mxu1  ;;  %v2514_v5 = vadd.f32 %v5636_v23, %v2308_v34  ;;  %v2512_v46 = vadd.f32 %v5640_v14, %v2306_v9  ;;  %v6169_v14 = vld [vmem:[#allocation12_spill] sm:$0xff]  ;;  %v6171_v19 = vld [vmem:[#allocation5_spill] sm:$0xff]  ;;  %v6173_v54 = vld [vmem:[#allocation26_spill] sm:$0xff] }
 0x205   : > { %v3648_v41 = vpack.c.bf16 %v3056_v53, %v3056_v53  ;;  %v3054_v21 = vmax.f32 %v3022_v56, 0.0  ;;  %v3027_v2 = vadd.f32 %v5729_v4, %v2988_v20  ;;  %v2986_v55 = vmul.f32 %v5720_v15, %v2947_v1  ;;  %v2860_v60 = vpop.f32.mrf.mxu0 }
 0x206   : > { %3214 = vst.msk [vmem:[%s5755_s22 + $0x10] sm:$0xf] %vm3209_vm8, %v3645_v25  ;;  %v2950_v37 = vadd.f32 %v4112_v58, %v2738_v35  ;;  %v2736_v7 = vadd.f32 %v2635_v31, %v2508_v51  ;;  %v4081_v24 = vpop.f32.mrf.mxu1  ;;  %v2309_v23 = vadd.f32 %v5654_v40, %v5544_v63  ;;  %v2517_v17 = vadd.f32 %v5644_v42, %v2311_v28  ;;  %v6172_v42 = vld [vmem:[#allocation10_spill] sm:$0xff]  ;;  %v6174_v31 = vld [vmem:[#allocation23_spill] sm:$0xff] }
 0x207   : > { %3217 = vst.msk [vmem:[%s5755_s22 + $0x1c] sm:$0xf] %vm3209_vm8, %v3648_v41  ;;  %v3646_v32 = vpack.c.bf16 %v3054_v21, %v3054_v21  ;;  %v3059_v43 = vmax.f32 %v3027_v2, 0.0  ;;  %v3025_v59 = vadd.f32 %v5729_v4, %v2986_v55  ;;  %v2741_v13 = vadd.f32 %v4081_v24, %v2513_v11  ;;  %v4116_v49 = vpop.f32.mrf.mxu0  ;;  %v6175_v21 = vld [vmem:[#allocation14_spill] sm:$0xff] }
 0x208   : > { %v2989_v61 = vmul.f32 %v5720_v15, %v2950_v37  ;;  %v2948_v16 = vadd.f32 %v2847_v10, %v2736_v7  ;;  %v2648_v30 = vpop.f32.mrf.mxu1  ;;  %v2312_v26 = vadd.f32 %v6170_v39, %v6169_v14  ;;  %v2515_v36 = vadd.f32 %v6171_v19, %v2309_v23  ;;  %v6176_v2 = vld [vmem:[#allocation6_spill] sm:$0xff] }
 0x209   : > { %3215 = vst.msk [vmem:[%s5755_s22 + $0x14] sm:$0xf] %vm3209_vm8, %v3646_v32  ;;  %v3651_v62 = vpack.c.bf16 %v3059_v43, %v3059_v43  ;;  %v3057_v45 = vmax.f32 %v3025_v59, 0.0  ;;  %v2953_v33 = vadd.f32 %v4115_v47, %v2741_v13  ;;  %v2739_v57 = vadd.f32 %v2648_v30, %v2511_v3  ;;  %v2863_v29 = vpop.f32.mrf.mxu0  ;;  %v6177_v59 = vld [vmem:[#allocation19_spill] sm:$0xff] }
 0x20a   : > { %v3028_v50 = vadd.f32 %v5729_v4, %v2989_v61  ;;  %v2987_v22 = vmul.f32 %v5720_v15, %v2948_v16  ;;  %v4082_v6 = vpop.f32.mrf.mxu1  ;;  %v2310_v53 = vadd.f32 %v6173_v54, %v6172_v42  ;;  %v2518_v41 = vadd.f32 %v6174_v31, %v2312_v26  ;;  %v6183_v26 = vld [vmem:[#allocation11_spill] sm:$0xff] }
 0x20b   : > { %3220 = vst.msk [vmem:[%s5755_s22 + $0x28] sm:$0xf] %vm3209_vm8, %v3651_v62  ;;  %v3649_v12 = vpack.c.bf16 %v3057_v45, %v3057_v45  ;;  %v2992_v58 = vmul.f32 %v5720_v15, %v2953_v33  ;;  %v2951_v48 = vadd.f32 %v2860_v60, %v2739_v57  ;;  %v2742_v38 = vadd.f32 %v4082_v6, %v2514_v5  ;;  %v4119_v27 = vpop.f32.mrf.mxu0  ;;  %v6179_v5 = vld [vmem:[#allocation9_spill] sm:$0xff] }
 0x20c   : > { %v3060_v52 = vmax.f32 %v3028_v50, 0.0  ;;  %v3026_v63 = vadd.f32 %v5729_v4, %v2987_v22  ;;  %v2651_v40 = vpop.f32.mrf.mxu1  ;;  %v2315_v55 = vadd.f32 %v6176_v2, %v6175_v21  ;;  %v2516_v13 = vadd.f32 %v6177_v59, %v2310_v53  ;;  %v6181_v50 = vld [vmem:[#allocation18_spill] sm:$0xff]  ;;  %v6186_v53 = vld [vmem:[#allocation7_spill] sm:$0xff] }
 0x20d   : > { %3218 = vst.msk [vmem:[%s5755_s22 + $0x20] sm:$0xf] %vm3209_vm8, %v3649_v12  ;;  %v3031_v18 = vadd.f32 %v5729_v4, %v2992_v58  ;;  %v2990_v8 = vmul.f32 %v5720_v15, %v2951_v48  ;;  %v2954_v10 = vadd.f32 %v4116_v49, %v2742_v38  ;;  %v2740_v51 = vadd.f32 %v2651_v40, %v2512_v46  ;;  %v2876_v44 = vpop.f32.mrf.mxu0  ;;  %v6178_v49 = vld [vmem:[#allocation16_spill] sm:$0xff]  ;;  %v6182_v22 = vld [vmem:[#allocation30_spill] sm:$0xff] }
 0x20e   : > { %v3652_v56 = vpack.c.bf16 %v3060_v52, %v3060_v52  ;;  %v3058_v20 = vmax.f32 %v3026_v63, 0.0  ;;  %v4085_v1 = vpop.f32.mrf.mxu1  ;;  %v2313_v28 = vadd.f32 %v6179_v5, %v6178_v49  ;;  %v6180_v46 = vld [vmem:[#allocation24_spill] sm:$0xff]  ;;  %v2316_v6 = vadd.f32 %v6182_v22, %v6181_v50  ;;  %v6184_v63 = vld [vmem:[#allocation22_spill] sm:$0xff] }
 0x20f   : > { %v3063_v47 = vmax.f32 %v3031_v18, 0.0  ;;  %v3029_v11 = vadd.f32 %v5729_v4, %v2990_v8  ;;  %v2993_v34 = vmul.f32 %v5720_v15, %v2954_v10  ;;  %v2952_v25 = vadd.f32 %v2863_v29, %v2740_v51  ;;  %v4120_v35 = vpop.f32.mrf.mxu0  ;;  %v6185_v40 = vld [vmem:[#allocation32_spill] sm:$0xff] }
 0x210   : > { %3221 = vst.msk [vmem:[%s5755_s22 + $0x2c] sm:$0xf] %vm3209_vm8, %v3652_v56  ;;  %v3650_v60 = vpack.c.bf16 %v3058_v20, %v3058_v20  ;;  %v2745_v3 = vadd.f32 %v4085_v1, %v2517_v17  ;;  %v2664_v9 = vpop.f32.mrf.mxu1  ;;  %v2521_v23 = vadd.f32 %v6180_v46, %v2315_v55  ;;  %v2519_v52 = vadd.f32 %v6183_v26, %v2313_v28  ;;  %v6187_v20 = vld [vmem:[#allocation27_spill] sm:$0xff]  ;;  %v6188_v1 = vld [vmem:[#allocation34_spill] sm:$0xff]  ;;  %v6189_v55 = vld [vmem:[#allocation29_spill] sm:$0xff] }
 0x211   : > { %v3655_v37 = vpack.c.bf16 %v3063_v47, %v3063_v47  ;;  %v3061_v7 = vmax.f32 %v3029_v11, 0.0  ;;  %v3032_v24 = vadd.f32 %v5729_v4, %v2993_v34  ;;  %v2991_v32 = vmul.f32 %v5720_v15, %v2952_v25  ;;  %v2879_v43 = vpop.f32.mrf.mxu0  ;;  %v6192_v28 = vld [vmem:[#allocation31_spill] sm:$0xff] }
 0x212   : > { %3219 = vst.msk [vmem:[%s5755_s22 + $0x24] sm:$0xf] %vm3209_vm8, %v3650_v60  ;;  %v2957_v61 = vadd.f32 %v4119_v27, %v2745_v3  ;;  %v2743_v16 = vadd.f32 %v2664_v9, %v2515_v36  ;;  %v4086_v30 = vpop.f32.mrf.mxu1  ;;  %v2314_v18 = vadd.f32 %v6185_v40, %v6184_v63  ;;  %v2522_v56 = vadd.f32 %v6186_v53, %v2316_v6  ;;  %v6190_v3 = vld [vmem:[#allocation8_spill] sm:$0xff]  ;;  %v6195_v6 = vld [vmem:[#allocation33_spill] sm:$0xff] }
 0x213   : > { %3224 = vst.msk [vmem:[%s5755_s22 + $0x38] sm:$0xf] %vm3209_vm8, %v3655_v37  ;;  %v3653_v62 = vpack.c.bf16 %v3061_v7, %v3061_v7  ;;  %v3064_v45 = vmax.f32 %v3032_v24, 0.0  ;;  %v3030_v33 = vadd.f32 %v5729_v4, %v2991_v32  ;;  %v2746_v57 = vadd.f32 %v4086_v30, %v2518_v41  ;;  %v4123_v29 = vpop.f32.mrf.mxu0  ;;  %v6191_v9 = vld [vmem:[#allocation36_spill] sm:$0xff]  ;;  %v6194_v30 = vld [vmem:[#allocation38_spill] sm:$0xff] }
 0x214   : > { %v2996_v12 = vmul.f32 %v5720_v15, %v2957_v61  ;;  %v2955_v58 = vadd.f32 %v2876_v44, %v2743_v16  ;;  %v2667_v48 = vpop.f32.mrf.mxu1  ;;  %v2319_v47 = vadd.f32 %v6188_v1, %v6187_v20  ;;  %v2520_v60 = vadd.f32 %v6189_v55, %v2314_v18  ;;  %v6193_v16 = vld [vmem:[#allocation13_spill] sm:$0xff]  ;;  %v6198_v18 = vld [vmem:[#allocation35_spill] sm:$0xff] }
 0x215   : > { %3222 = vst.msk [vmem:[%s5755_s22 + $0x30] sm:$0xf] %vm3209_vm8, %v3653_v62  ;;  %v3656_v38 = vpack.c.bf16 %v3064_v45, %v3064_v45  ;;  %v3062_v27 = vmax.f32 %v3030_v33, 0.0  ;;  %v2958_v17 = vadd.f32 %v4120_v35, %v2746_v57  ;;  %v2744_v14 = vadd.f32 %v2667_v48, %v2516_v13  ;;  %v2892_v39 = vpop.f32.mrf.mxu0  ;;  %v6197_v48 = vld [vmem:[#allocation40_spill] sm:$0xff]  ;;  %v6200_v1 = vld [vmem:[#allocation17_spill] sm:$0xff] }
 0x216   : > { %v3035_v8 = vadd.f32 %v5729_v4, %v2996_v12  ;;  %v2994_v10 = vmul.f32 %v5720_v15, %v2955_v58  ;;  %v4089_v51 = vpop.f32.mrf.mxu1  ;;  %v2317_v37 = vadd.f32 %v6191_v9, %v6190_v3  ;;  %v2525_v61 = vadd.f32 %v6192_v28, %v2319_v47  ;;  %v6196_v58 = vld [vmem:[#allocation15_spill] sm:$0xff]  ;;  %v6201_v47 = vld [vmem:[#allocation42_spill] sm:$0xff]  ;;  %v6203_v3 = vld [vmem:[#allocation44_spill] sm:$0xff] }
 0x217   : > { %3225 = vst.msk [vmem:[%s5755_s22 + $0x3c] sm:$0xf] %vm3209_vm8, %v3656_v38  ;;  %v3654_v44 = vpack.c.bf16 %v3062_v27, %v3062_v27  ;;  %v2997_v19 = vmul.f32 %v5720_v15, %v2958_v17  ;;  %v2956_v36 = vadd.f32 %v2879_v43, %v2744_v14  ;;  %v2749_v42 = vadd.f32 %v4089_v51, %v2521_v23  ;;  %v4124_v54 = vpop.f32.mrf.mxu0  ;;  %v6205_v28 = vld [vmem:[#allocation39_spill] sm:$0xff] }
 0x218   : > { %v3067_v11 = vmax.f32 %v3035_v8, 0.0  ;;  %v3033_v34 = vadd.f32 %v5729_v4, %v2994_v10  ;;  %v2680_v25 = vpop.f32.mrf.mxu1  ;;  %v2320_v62 = vadd.f32 %v6194_v30, %v6193_v16  ;;  %v2523_v12 = vadd.f32 %v6195_v6, %v2317_v37  ;;  %v6204_v37 = vld [vmem:[#allocation25_spill] sm:$0xff]  ;;  %v6206_v16 = vld [vmem:[#allocation28_spill] sm:$0xff]  ;;  %v6207_v30 = vld [vmem:[#allocation46_spill] sm:$0xff] }
 0x219   : > { %3223 = vst.msk [vmem:[%s5755_s22 + $0x34] sm:$0xf] %vm3209_vm8, %v3654_v44  ;;  %v3036_v35 = vadd.f32 %v5729_v4, %v2997_v19  ;;  %v2995_v31 = vmul.f32 %v5720_v15, %v2956_v36  ;;  %v2961_v41 = vadd.f32 %v4123_v29, %v2749_v42  ;;  %v2747_v21 = vadd.f32 %v2680_v25, %v2519_v52  ;;  %v2895_v2 = vpop.f32.mrf.mxu0 }
 0x21a   : > { %v3659_v7 = vpack.c.bf16 %v3067_v11, %v3067_v11  ;;  %v3065_v24 = vmax.f32 %v3033_v34, 0.0  ;;  %v4090_v32 = vpop.f32.mrf.mxu1  ;;  %v2318_v38 = vadd.f32 %v6197_v48, %v6196_v58  ;;  %v2526_v8 = vadd.f32 %v6198_v18, %v2320_v62 }
 0x21b   : > { %v3068_v43 = vmax.f32 %v3036_v35, 0.0  ;;  %v3034_v59 = vadd.f32 %v5729_v4, %v2995_v31  ;;  %v3000_v13 = vmul.f32 %v5720_v15, %v2961_v41  ;;  %v2959_v49 = vadd.f32 %v2892_v39, %v2747_v21  ;;  %v4127_v5 = vpop.f32.mrf.mxu0 }
 0x21c   : > { %3228 = vst.msk [vmem:[%s5755_s22 + $0x48] sm:$0xf] %vm3209_vm8, %v3659_v7  ;;  %v3657_v45 = vpack.c.bf16 %v3065_v24, %v3065_v24  ;;  %v2750_v33 = vadd.f32 %v4090_v32, %v2522_v56  ;;  %v2683_v57 = vpop.f32.mrf.mxu1  ;;  %v6199_v56 = vld [vmem:[#allocation37_spill] sm:$0xff]  ;;  %v2323_v11 = vadd.f32 %v6201_v47, %v6200_v1  ;;  %v2324_v7 = vadd.f32 %v5707_v0, %v6204_v37 }
 0x21d   : > { %v3660_v29 = vpack.c.bf16 %v3068_v43, %v3068_v43  ;;  %v3066_v46 = vmax.f32 %v3034_v59, 0.0  ;;  %v3039_v23 = vadd.f32 %v5729_v4, %v3000_v13  ;;  %v2998_v50 = vmul.f32 %v5720_v15, %v2959_v49  ;;  %v2908_v22 = vpop.f32.mrf.mxu0 }
 0x21e   : > { %3226 = vst.msk [vmem:[%s5755_s22 + $0x40] sm:$0xf] %vm3209_vm8, %v3657_v45  ;;  %v2962_v27 = vadd.f32 %v4124_v54, %v2750_v33  ;;  %v2748_v17 = vadd.f32 %v2683_v57, %v2520_v60  ;;  %v4093_v14 = vpop.f32.mrf.mxu1  ;;  %v2524_v20 = vadd.f32 %v6199_v56, %v2318_v38  ;;  %v6202_v60 = vld [vmem:[#allocation20_spill] sm:$0xff]  ;;  %v2322_v62 = vadd.f32 %v6207_v30, %v6206_v16 }
 0x21f   : > { %3229 = vst.msk [vmem:[%s5755_s22 + $0x4c] sm:$0xf] %vm3209_vm8, %v3660_v29  ;;  %v3658_v39 = vpack.c.bf16 %v3066_v46, %v3066_v46  ;;  %v3071_v26 = vmax.f32 %v3039_v23, 0.0  ;;  %v3037_v52 = vadd.f32 %v5729_v4, %v2998_v50  ;;  %v2753_v63 = vadd.f32 %v4093_v14, %v2525_v61  ;;  %v4128_v40 = vpop.f32.mrf.mxu0 }
 0x220   : > { %v3001_v10 = vmul.f32 %v5720_v15, %v2962_v27  ;;  %v2960_v51 = vadd.f32 %v2895_v2, %v2748_v17  ;;  %v2696_v44 = vpop.f32.mrf.mxu1  ;;  %v2321_v9 = vadd.f32 %v6203_v3, %v6202_v60  ;;  %v2529_v61 = vadd.f32 %v6205_v28, %v2323_v11 }
 0x221   : > { %3227 = vst.msk [vmem:[%s5755_s22 + $0x44] sm:$0xf] %vm3209_vm8, %v3658_v39  ;;  %v3663_v19 = vpack.c.bf16 %v3071_v26, %v3071_v26  ;;  %v3069_v36 = vmax.f32 %v3037_v52, 0.0  ;;  %v2965_v42 = vadd.f32 %v4127_v5, %v2753_v63  ;;  %v2751_v54 = vadd.f32 %v2696_v44, %v2523_v12  ;;  %v2911_v53 = vpop.f32.mrf.mxu0  ;;  %v6209_v12 = vld [vmem:[#allocation43_spill] sm:$0xff]  ;;  %v6210_v52 = vld [vmem:[#allocation45_spill] sm:$0xff] }
 0x222   : > { %v3040_v34 = vadd.f32 %v5729_v4, %v3001_v10  ;;  %v2999_v25 = vmul.f32 %v5720_v15, %v2960_v51  ;;  %v4094_v35 = vpop.f32.mrf.mxu1  ;;  %v2530_v58 = vadd.f32 %v6209_v12, %v2324_v7  ;;  %v2528_v63 = vadd.f32 %v6210_v52, %v2322_v62 }
 0x223   : > { %3232 = vst.msk [vmem:[%s5755_s22 + $0x58] sm:$0xf] %vm3209_vm8, %v3663_v19  ;;  %v3661_v31 = vpack.c.bf16 %v3069_v36, %v3069_v36  ;;  %v3004_v41 = vmul.f32 %v5720_v15, %v2965_v42  ;;  %v2963_v21 = vadd.f32 %v2908_v22, %v2751_v54  ;;  %v2754_v2 = vadd.f32 %v4094_v35, %v2526_v8  ;;  %v4131_v55 = vpop.f32.mrf.mxu0  ;;  %v6208_v22 = vld [vmem:[#allocation41_spill] sm:$0xff] }
 0x224   : > { %v3072_v24 = vmax.f32 %v3040_v34, 0.0  ;;  %v3038_v32 = vadd.f32 %v5729_v4, %v2999_v25  ;;  %v2699_v43 = vpop.f32.mrf.mxu1  ;;  %v2527_v6 = vadd.f32 %v6208_v22, %v2321_v9 }
 0x225   : > { %3230 = vst.msk [vmem:[%s5755_s22 + $0x50] sm:$0xf] %vm3209_vm8, %v3661_v31  ;;  %v3043_v59 = vadd.f32 %v5729_v4, %v3004_v41  ;;  %v3002_v13 = vmul.f32 %v5720_v15, %v2963_v21  ;;  %v2966_v49 = vadd.f32 %v4128_v40, %v2754_v2  ;;  %v2752_v5 = vadd.f32 %v2699_v43, %v2524_v20  ;;  %v2924_v57 = vpop.f32.mrf.mxu0 }
 0x226   : > { %v3664_v45 = vpack.c.bf16 %v3072_v24, %v3072_v24  ;;  %v3070_v0 = vmax.f32 %v3038_v32, 0.0  ;;  %v4097_v33 = vpop.f32.mrf.mxu1 }
 0x227   : > { %v3075_v29 = vmax.f32 %v3043_v59, 0.0  ;;  %v3041_v46 = vadd.f32 %v5729_v4, %v3002_v13  ;;  %v3005_v23 = vmul.f32 %v5720_v15, %v2966_v49  ;;  %v2964_v50 = vadd.f32 %v2911_v53, %v2752_v5  ;;  %v4132_v10 = vpop.f32.mrf.mxu0 }
 0x228   : > { %3233 = vst.msk [vmem:[%s5755_s22 + $0x5c] sm:$0xf] %vm3209_vm8, %v3664_v45  ;;  %v3662_v48 = vpack.c.bf16 %v3070_v0, %v3070_v0  ;;  %v2757_v38 = vadd.f32 %v4097_v33, %v2529_v61  ;;  %v2712_v27 = vpop.f32.mrf.mxu1 }
 0x229   : > { %v3667_v17 = vpack.c.bf16 %v3075_v29, %v3075_v29  ;;  %v3073_v14 = vmax.f32 %v3041_v46, 0.0  ;;  %v3044_v39 = vadd.f32 %v5729_v4, %v3005_v23  ;;  %v3003_v26 = vmul.f32 %v5720_v15, %v2964_v50  ;;  %v2927_v25 = vpop.f32.mrf.mxu0 }
 0x22a   : > { %3231 = vst.msk [vmem:[%s5755_s22 + $0x54] sm:$0xf] %vm3209_vm8, %v3662_v48  ;;  %v2969_v40 = vadd.f32 %v4131_v55, %v2757_v38  ;;  %v2755_v18 = vadd.f32 %v2712_v27, %v2527_v6  ;;  %v4098_v8 = vpop.f32.mrf.mxu1 }
 0x22b   : > { %3236 = vst.msk [vmem:[%s5755_s22 + $0x68] sm:$0xf] %vm3209_vm8, %v3667_v17  ;;  %v3665_v51 = vpack.c.bf16 %v3073_v14, %v3073_v14  ;;  %v3076_v44 = vmax.f32 %v3044_v39, 0.0  ;;  %v3042_v19 = vadd.f32 %v5729_v4, %v3003_v26  ;;  %v2758_v36 = vadd.f32 %v4098_v8, %v2530_v58 }
 0x22c   : > { %v3008_v42 = vmul.f32 %v5720_v15, %v2969_v40  ;;  %v2967_v54 = vadd.f32 %v2924_v57, %v2755_v18  ;;  %v2715_v53 = vpop.f32.mrf.mxu1 }
 0x22d   : > { %3234 = vst.msk [vmem:[%s5755_s22 + $0x60] sm:$0xf] %vm3209_vm8, %v3665_v51  ;;  %v3668_v56 = vpack.c.bf16 %v3076_v44, %v3076_v44  ;;  %v3074_v20 = vmax.f32 %v3042_v19, 0.0  ;;  %v2970_v1 = vadd.f32 %v4132_v10, %v2758_v36  ;;  %v2756_v47 = vadd.f32 %v2715_v53, %v2528_v63 }
 0x22e   : > { %v3047_v11 = vadd.f32 %v5729_v4, %v3008_v42  ;;  %v3006_v34 = vmul.f32 %v5720_v15, %v2967_v54 }
 0x22f   : > { %3237 = vst.msk [vmem:[%s5755_s22 + $0x6c] sm:$0xf] %vm3209_vm8, %v3668_v56  ;;  %v3666_v35 = vpack.c.bf16 %v3074_v20, %v3074_v20  ;;  %v3009_v31 = vmul.f32 %v5720_v15, %v2970_v1  ;;  %v2968_v41 = vadd.f32 %v2927_v25, %v2756_v47 }
 0x230   : > { %v3079_v21 = vmax.f32 %v3047_v11, 0.0  ;;  %v3045_v2 = vadd.f32 %v5729_v4, %v3006_v34 }
 0x231   : > { %3235 = vst.msk [vmem:[%s5755_s22 + $0x64] sm:$0xf] %vm3209_vm8, %v3666_v35  ;;  %v3048_v55 = vadd.f32 %v5729_v4, %v3009_v31  ;;  %v3007_v60 = vmul.f32 %v5720_v15, %v2968_v41 }
 0x232   : > { %v3671_v3 = vpack.c.bf16 %v3079_v21, %v3079_v21  ;;  %v3077_v9 = vmax.f32 %v3045_v2, 0.0 }
 0x233   : > { %v3080_v37 = vmax.f32 %v3048_v55, 0.0  ;;  %v3046_v7 = vadd.f32 %v5729_v4, %v3007_v60 }
 0x234   : > { %3240 = vst.msk [vmem:[%s5755_s22 + $0x78] sm:$0xf] %vm3209_vm8, %v3671_v3  ;;  %v3669_v24 = vpack.c.bf16 %v3077_v9, %v3077_v9 }
 0x235   : > { %v3672_v32 = vpack.c.bf16 %v3080_v37, %v3080_v37  ;;  %v3078_v43 = vmax.f32 %v3046_v7, 0.0 }
 0x236   : > { %3238 = vst.msk [vmem:[%s5755_s22 + $0x70] sm:$0xf] %vm3209_vm8, %v3669_v24 }
 0x237   : > { %3241 = vst.msk [vmem:[%s5755_s22 + $0x7c] sm:$0xf] %vm3209_vm8, %v3672_v32  ;;  %v3670_v15 = vpack.c.bf16 %v3078_v43, %v3078_v43 }
 0x239   : > { %3239 = vst.msk [vmem:[%s5755_s22 + $0x74] sm:$0xf] %vm3209_vm8, %v3670_v15 }
 0x23a   : > { %4234 = shalt.err (!%p4231_p5)
}
 0x23b   : > { %s4235_s10 = scalar_lea.hbm %s5947_s5, 2048  ;;  %s4239_s13 = scalar_lea.hbm %s6006_s4, 4096 }
 0x23c   : > { %p4236_p6 = scmp.ne.s32.totalorder %s5947_s5, %s4235_s10  ;;  %p4240_p10 = scmp.lt.s32.totalorder %s5947_s5, %s6006_s4 }
 0x23d   : > { %p4241_p11 = scmp.lt.s32.totalorder %s4239_s13, %s4235_s10 }
 0x23e   : > { %p4237_p7 = pnand %p4236_p6, %p4367_p4 }
 0x23f   : > { %p4242_p12 = por %p4241_p11, %p4240_p10 }
 0x240   : > { %p4238_p9 = pneg %p4237_p7 }
 0x242   : > { %p4243_p13 = pnand %p4242_p12, %p4238_p9 }
 0x244   : > { %4246 = shalt.err (!%p4243_p13)
}
 0x245   : > { %s4300_s22 = smov 64   ;;  %s4301_s24 = smov 4  }
 0x246   : > { %4146 = dma.vmem_to_hbm [thread:$0]  (%p4367_p4), %s5949_s26, 2048, %s5947_s5, %s5957_s18, %s4300_s22, %s4300_s22, %s4301_s24  }
 0x247 PF: > { %p4152_p0 = scmp.ge.s32.totalorder %s4297_s20, 2  ;;  %s3272_s29 = sand.u32 1, %s4277_s15  }
 0x248   : > { %s3273_s30 = scalar_lea.sflag [#allocation3], %s3272_s29 }
 0x249   : > { %p4149_p1 = pnand %p4152_p0, %p4374_p8 }
 0x24b   : > { %p4150_p2 = pneg %p4149_p1 }
 0x24d   : > { %4272 = dma.done.wait (%p4150_p2), %s3273_s30, 2048  }
 0x24e   : > { %4274 = vsyncadd (%p4150_p2), %s3273_s30, 4294965248  ;;  %s17_s20 = sadd.s32 1, %s4297_s20   ;;  %s6211_s15 = smov %s4281_s16 }
 0x24f   : > { %p14_p3 = scmp.ge.s32.totalorder %s17_s20, 4   ;;  %s6212_s16 = smov %s4285_s17 }
 0x250   : > { %s6213_s17 = smov %s4380_s28  ;;  %s6214_s18 = smov %s4293_s19 }
 0x251   : > { %s6215_s19 = smov %s6217_s23  ;;  %16 = sbr.rel (!%p14_p3) target bundleno = 4 (0x4), region = 88 }
 0x256   :  { %3278 = vsyncpa [#allocation3], 1 }
 0x257   :  { %3280 = vsyncpa [#allocation3 + $0x1], 1 }

</bundles_post_ra>
